<compile_context>
chip_gen: v7x
topology: tpu7x:2x2x1
jax: 0.10.0
libtpu: 0.0.40
codegen_flags: <defaults>
</compile_context>

<pallas_src>
import functools

import jax
import jax.numpy as jnp
from jax.experimental import pallas as pl
from jax.experimental.pallas import tpu as pltpu


# ----------------------------------------------------------------------------
# Interpolation weight matrices (align_corners=True bilinear), built in glue.
# No dense identity matrix: one-hot rows are built with iota comparisons.
# ----------------------------------------------------------------------------
def _interp_matrix(out_size: int, in_size: int) -> jnp.ndarray:
    """(out_size, in_size) weights for 1-D linear resize, align_corners=True."""
    if out_size == 1:
        src = jnp.zeros((1,), jnp.float32)
    else:
        src = jnp.arange(out_size, dtype=jnp.float32) * (
            (in_size - 1) / (out_size - 1)
        )
    i0 = jnp.clip(jnp.floor(src).astype(jnp.int32), 0, in_size - 1)
    i1 = jnp.clip(i0 + 1, 0, in_size - 1)
    w1 = src - i0.astype(jnp.float32)
    w0 = 1.0 - w1
    cols = jnp.arange(in_size, dtype=jnp.int32)[None, :]
    m = (cols == i0[:, None]).astype(jnp.float32) * w0[:, None] + (
        cols == i1[:, None]
    ).astype(jnp.float32) * w1[:, None]
    return m


def _round_up(x: int, m: int) -> int:
    return ((x + m - 1) // m) * m


def _pick_tk(w: int) -> int:
    """Largest lane-aligned chunk of W_in that evenly divides it."""
    for tk in (512, 256, 128):
        if w % tk == 0:
            return tk
    return w  # full width (always legal: block == full dim)


# ----------------------------------------------------------------------------
# Fused (x * 255) + bilinear-upsample kernel, all channels per grid step.
#   grid axis k: reduction over W_in chunks ("arbitrary").
#   acc_ref (VMEM scratch): accumulated W-contraction  x @ Ww^T  -> (C, H, Ppad)
#   last step: per-channel H-contraction  (255*Wh) @ acc  -> (C, O, Ppad)
# ----------------------------------------------------------------------------
def _resize_kernel(x_ref, wwt_ref, wh_ref, o_ref, acc_ref):
    k = pl.program_id(0)
    C = x_ref.shape[0]

    @pl.when(k == 0)
    def _():
        acc_ref[...] = jnp.zeros_like(acc_ref)

    wwt = wwt_ref[...]                       # (tk, Ppad), lane-dense
    for c in range(C):                       # C is small & static: unrolled
        acc_ref[c] += jnp.dot(
            x_ref[c], wwt, preferred_element_type=jnp.float32
        )                                    # (H, tk) @ (tk, Ppad)

    @pl.when(k == pl.num_programs(0) - 1)
    def _():
        wh = wh_ref[...]                     # (O, H), *255 folded in
        for c in range(C):
            o_ref[c] = jnp.dot(
                wh, acc_ref[c], preferred_element_type=jnp.float32
            )                                # (O, H) @ (H, Ppad)


def preprocess(img_chw: jnp.ndarray):
    """inputs[0] (C,H,W) -> (C, out_h, out_w) resized * 255, plus python scale."""
    C, H, W = img_chw.shape
    scale = 320.0 / float(min(H, W))
    # recompute_scale_factor=True: output size = floor(in * scale)
    out_h = int(H * scale)
    out_w = int(W * scale)
    p_pad = _round_up(out_w, 128)            # lane-dense output width

    # *255 folded into the row-interpolation matrix (free, trace-time constant)
    wh255 = _interp_matrix(out_h, H) * 255.0                    # (out_h, H)
    wwt = _interp_matrix(out_w, W).T                            # (W, out_w)
    wwt_pad = jnp.pad(wwt, ((0, 0), (0, p_pad - out_w)))        # (W, p_pad)

    tk = _pick_tk(W)
    nk = W // tk

    # VMEM budget estimate (double-buffered blocks + scratch + output), clamped.
    blk_bytes = 4 * (
        2 * (C * H * tk + tk * p_pad + out_h * H)
        + C * H * p_pad
        + 2 * C * out_h * p_pad
    )
    vmem_limit = min(max(blk_bytes + (8 << 20), 32 << 20), 48 << 20)

    padded = pl.pallas_call(
        _resize_kernel,
        out_shape=jax.ShapeDtypeStruct((C, out_h, p_pad), jnp.float32),
        grid_spec=pltpu.PrefetchScalarGridSpec(
            num_scalar_prefetch=0,
            grid=(nk,),
            in_specs=[
                pl.BlockSpec((C, H, tk), lambda k: (0, 0, k)),      # x chunk
                pl.BlockSpec((tk, p_pad), lambda k: (k, 0)),        # Ww^T chunk
                pl.BlockSpec((out_h, H), lambda k: (0, 0)),         # 255*Wh
            ],
            out_specs=pl.BlockSpec((C, out_h, p_pad), lambda k: (0, 0, 0)),
            scratch_shapes=[pltpu.VMEM((C, H, p_pad), jnp.float32)],
        ),
        compiler_params=pltpu.CompilerParams(
            dimension_semantics=("arbitrary",),
            vmem_limit_bytes=vmem_limit,
        ),
    )(img_chw.astype(jnp.float32), wwt_pad, wh255)

    resized = padded[:, :, :out_w]           # drop lane padding in glue
    return resized, scale


# ----------------------------------------------------------------------------
# Full Wrapper.forward equivalent
# ----------------------------------------------------------------------------
def wrapper_forward(inputs):
    img = inputs[0]                                  # (C, H, W), float in [0, 1]
    x_resized, scale = preprocess(img)               # (C, ~320, ~320) float32

    # TODO(synk): `create_predictor('torchscript_int8@tracing')` is an external
    # quantized detector checkpoint with no in-script definition; substitute
    # deterministic placeholder detections so the postprocess path can run.
    k1, k2 = jax.random.split(jax.random.PRNGKey(0))
    n_det = 8
    raw_boxes = jax.random.uniform(k1, (n_det, 4), jnp.float32) * 320.0   # out[0]
    raw_labels = jnp.zeros((n_det,), jnp.int32)                           # out[1]
    raw_scores = jnp.sort(jax.random.uniform(k2, (n_det,), jnp.float32))[::-1]

    coco_idx = jnp.array([1], dtype=jnp.int32)       # self.coco_idx = tensor([1])

    inv_scale = 1.0 / scale                          # boxes / scale as fused mul
    res = {
        "boxes": raw_boxes * inv_scale,                       # plain XLA (tiny)
        "labels": jnp.take(coco_idx, raw_labels, axis=0),     # index_select
        "scores": raw_scores,
    }
    return (inputs, [res]), x_resized, scale


if __name__ == "__main__":
    key = jax.random.PRNGKey(0)
    # inputs[0]: a small CHW image, values in [0, 1]
    img = jax.random.uniform(key, (3, 16, 16), dtype=jnp.float32)
    inputs = [img]

    (out_inputs, results), x_resized, scale = wrapper_forward(inputs)
    jax.block_until_ready(x_resized)
    jax.block_until_ready(results[0]["boxes"])

    assert x_resized.shape == (3, 320, 320)
    # sanity: align_corners=True preserves exact corner values (times 255)
    assert abs(float(x_resized[0, 0, 0]) - 255.0 * float(img[0, 0, 0])) < 1e-2
    assert abs(float(x_resized[2, -1, -1]) - 255.0 * float(img[2, -1, -1])) < 1e-2
    # sanity: labels mapped through coco_idx, boxes rescaled by 1/scale
    assert results[0]["labels"].shape == (8,) and int(results[0]["labels"][0]) == 1

    print("KERNEL_OK")
</pallas_src>

<mosaic_0001>
module attributes {stable_mosaic.version = 11 : i64} {
  func.func @_resize_kernel(%arg0: i32, %arg1: memref<3x16x16xf32, #tpu.memory_space<vmem>>, %arg2: memref<16x384xf32, #tpu.memory_space<vmem>>, %arg3: memref<320x16xf32, #tpu.memory_space<vmem>>, %arg4: memref<3x320x384xf32, #tpu.memory_space<vmem>>, %arg5: memref<3x16x384xf32, #tpu.memory_space<vmem>>) attributes {dimension_semantics = [#tpu.dimension_semantics<arbitrary>], iteration_bounds = array<i64: 1>, scalar_prefetch = 0 : i64, scratch_operands = 1 : i64, tpu.core_type = #tpu.core_type<tc>, window_params = [{transform_indices = @transform_0, window_bounds = array<i64: 3, 16, 16>}, {transform_indices = @transform_1, window_bounds = array<i64: 16, 384>}, {pipeline_mode = #tpu.pipeline_mode<synchronous>, transform_indices = @transform_2, window_bounds = array<i64: 320, 16>}, {pipeline_mode = #tpu.pipeline_mode<synchronous>, transform_indices = @transform_3, window_bounds = array<i64: 3, 320, 384>}]} {
    %c0_i32 = arith.constant 0 : i32
    %0 = arith.cmpi eq, %arg0, %c0_i32 : i32
    %1 = arith.extui %0 : i1 to i32
    %c0_i32_0 = arith.constant 0 : i32
    %2 = arith.cmpi ne, %1, %c0_i32_0 : i32
    scf.if %2 {
      %cst_31 = arith.constant 0.000000e+00 : f32
      %34 = vector.broadcast %cst_31 : f32 to vector<3x16x384xf32>
      %c0_32 = arith.constant 0 : index
      %c0_33 = arith.constant 0 : index
      %c0_34 = arith.constant 0 : index
      %35 = vector.load %arg5[%c0_32, %c0_33, %c0_34] : memref<3x16x384xf32, #tpu.memory_space<vmem>>, vector<3x16x384xf32>
      tpu.vector_store %arg5[%c0_32, %c0_33, %c0_34], %34 {strides = array<i32>} : memref<3x16x384xf32, #tpu.memory_space<vmem>>, vector<3x16x384xf32>,
    } else {
    }
    %c0 = arith.constant 0 : index
    %c0_1 = arith.constant 0 : index
    %3 = vector.load %arg2[%c0, %c0_1] : memref<16x384xf32, #tpu.memory_space<vmem>>, vector<16x384xf32>
    %c0_2 = arith.constant 0 : index
    %c0_3 = arith.constant 0 : index
    %c0_4 = arith.constant 0 : index
    %4 = vector.load %arg5[%c0_2, %c0_3, %c0_4] : memref<3x16x384xf32, #tpu.memory_space<vmem>>, vector<1x16x384xf32>
    %5 = vector.shape_cast %4 : vector<1x16x384xf32> to vector<16x384xf32>
    %c0_5 = arith.constant 0 : index
    %c0_6 = arith.constant 0 : index
    %c0_7 = arith.constant 0 : index
    %6 = vector.load %arg1[%c0_5, %c0_6, %c0_7] : memref<3x16x16xf32, #tpu.memory_space<vmem>>, vector<1x16x16xf32>
    %7 = vector.shape_cast %6 : vector<1x16x16xf32> to vector<16x16xf32>
    %cst = arith.constant dense<0.000000e+00> : vector<16x384xf32>
    %8 = tpu.matmul %7, %3, %cst {dimension_numbers = #tpu.dot_dimension_numbers<[1], [0], [0], [1], [0, 0, 1, 1], [], []>} : vector<16x16xf32>, vector<16x384xf32>, vector<16x384xf32> -> vector<16x384xf32>
    %9 = arith.addf %5, %8 : vector<16x384xf32>
    %c0_8 = arith.constant 0 : index
    %c0_9 = arith.constant 0 : index
    %c0_10 = arith.constant 0 : index
    %10 = vector.load %arg5[%c0_8, %c0_9, %c0_10] : memref<3x16x384xf32, #tpu.memory_space<vmem>>, vector<1x16x384xf32>
    %11 = vector.shape_cast %10 : vector<1x16x384xf32> to vector<16x384xf32>
    %12 = vector.shape_cast %9 : vector<16x384xf32> to vector<1x16x384xf32>
    tpu.vector_store %arg5[%c0_8, %c0_9, %c0_10], %12 {strides = array<i32>} : memref<3x16x384xf32, #tpu.memory_space<vmem>>, vector<1x16x384xf32>,
    %c1 = arith.constant 1 : index
    %c0_11 = arith.constant 0 : index
    %c0_12 = arith.constant 0 : index
    %13 = vector.load %arg5[%c1, %c0_11, %c0_12] : memref<3x16x384xf32, #tpu.memory_space<vmem>>, vector<1x16x384xf32>
    %14 = vector.shape_cast %13 : vector<1x16x384xf32> to vector<16x384xf32>
    %c1_13 = arith.constant 1 : index
    %c0_14 = arith.constant 0 : index
    %c0_15 = arith.constant 0 : index
    %15 = vector.load %arg1[%c1_13, %c0_14, %c0_15] : memref<3x16x16xf32, #tpu.memory_space<vmem>>, vector<1x16x16xf32>
    %16 = vector.shape_cast %15 : vector<1x16x16xf32> to vector<16x16xf32>
    %cst_16 = arith.constant dense<0.000000e+00> : vector<16x384xf32>
    %17 = tpu.matmul %16, %3, %cst_16 {dimension_numbers = #tpu.dot_dimension_numbers<[1], [0], [0], [1], [0, 0, 1, 1], [], []>} : vector<16x16xf32>, vector<16x384xf32>, vector<16x384xf32> -> vector<16x384xf32>
    %18 = arith.addf %14, %17 : vector<16x384xf32>
    %c1_17 = arith.constant 1 : index
    %c0_18 = arith.constant 0 : index
    %c0_19 = arith.constant 0 : index
    %19 = vector.load %arg5[%c1_17, %c0_18, %c0_19] : memref<3x16x384xf32, #tpu.memory_space<vmem>>, vector<1x16x384xf32>
    %20 = vector.shape_cast %19 : vector<1x16x384xf32> to vector<16x384xf32>
    %21 = vector.shape_cast %18 : vector<16x384xf32> to vector<1x16x384xf32>
    tpu.vector_store %arg5[%c1_17, %c0_18, %c0_19], %21 {strides = array<i32>} : memref<3x16x384xf32, #tpu.memory_space<vmem>>, vector<1x16x384xf32>,
    %c2 = arith.constant 2 : index
    %c0_20 = arith.constant 0 : index
    %c0_21 = arith.constant 0 : index
    %22 = vector.load %arg5[%c2, %c0_20, %c0_21] : memref<3x16x384xf32, #tpu.memory_space<vmem>>, vector<1x16x384xf32>
    %23 = vector.shape_cast %22 : vector<1x16x384xf32> to vector<16x384xf32>
    %c2_22 = arith.constant 2 : index
    %c0_23 = arith.constant 0 : index
    %c0_24 = arith.constant 0 : index
    %24 = vector.load %arg1[%c2_22, %c0_23, %c0_24] : memref<3x16x16xf32, #tpu.memory_space<vmem>>, vector<1x16x16xf32>
    %25 = vector.shape_cast %24 : vector<1x16x16xf32> to vector<16x16xf32>
    %cst_25 = arith.constant dense<0.000000e+00> : vector<16x384xf32>
    %26 = tpu.matmul %25, %3, %cst_25 {dimension_numbers = #tpu.dot_dimension_numbers<[1], [0], [0], [1], [0, 0, 1, 1], [], []>} : vector<16x16xf32>, vector<16x384xf32>, vector<16x384xf32> -> vector<16x384xf32>
    %27 = arith.addf %23, %26 : vector<16x384xf32>
    %c2_26 = arith.constant 2 : index
    %c0_27 = arith.constant 0 : index
    %c0_28 = arith.constant 0 : index
    %28 = vector.load %arg5[%c2_26, %c0_27, %c0_28] : memref<3x16x384xf32, #tpu.memory_space<vmem>>, vector<1x16x384xf32>
    %29 = vector.shape_cast %28 : vector<1x16x384xf32> to vector<16x384xf32>
    %30 = vector.shape_cast %27 : vector<16x384xf32> to vector<1x16x384xf32>
    tpu.vector_store %arg5[%c2_26, %c0_27, %c0_28], %30 {strides = array<i32>} : memref<3x16x384xf32, #tpu.memory_space<vmem>>, vector<1x16x384xf32>,
    %c0_i32_29 = arith.constant 0 : i32
    %31 = arith.cmpi eq, %arg0, %c0_i32_29 : i32
    %32 = arith.extui %31 : i1 to i32
    %c0_i32_30 = arith.constant 0 : i32
    %33 = arith.cmpi ne, %32, %c0_i32_30 : i32
    scf.if %33 {
      %c0_31 = arith.constant 0 : index
      %c0_32 = arith.constant 0 : index
      %34 = vector.load %arg3[%c0_31, %c0_32] : memref<320x16xf32, #tpu.memory_space<vmem>>, vector<320x16xf32>
      %c0_33 = arith.constant 0 : index
      %c0_34 = arith.constant 0 : index
      %c0_35 = arith.constant 0 : index
      %35 = vector.load %arg5[%c0_33, %c0_34, %c0_35] : memref<3x16x384xf32, #tpu.memory_space<vmem>>, vector<1x16x384xf32>
      %36 = vector.shape_cast %35 : vector<1x16x384xf32> to vector<16x384xf32>
      %cst_36 = arith.constant dense<0.000000e+00> : vector<320x384xf32>
      %37 = tpu.matmul %34, %36, %cst_36 {dimension_numbers = #tpu.dot_dimension_numbers<[1], [0], [0], [1], [0, 0, 1, 1], [], []>} : vector<320x16xf32>, vector<16x384xf32>, vector<320x384xf32> -> vector<320x384xf32>
      %c0_37 = arith.constant 0 : index
      %c0_38 = arith.constant 0 : index
      %c0_39 = arith.constant 0 : index
      %38 = vector.load %arg4[%c0_37, %c0_38, %c0_39] : memref<3x320x384xf32, #tpu.memory_space<vmem>>, vector<1x320x384xf32>
      %39 = vector.shape_cast %38 : vector<1x320x384xf32> to vector<320x384xf32>
      %40 = vector.shape_cast %37 : vector<320x384xf32> to vector<1x320x384xf32>
      tpu.vector_store %arg4[%c0_37, %c0_38, %c0_39], %40 {strides = array<i32>} : memref<3x320x384xf32, #tpu.memory_space<vmem>>, vector<1x320x384xf32>,
      %c1_40 = arith.constant 1 : index
      %c0_41 = arith.constant 0 : index
      %c0_42 = arith.constant 0 : index
      %41 = vector.load %arg5[%c1_40, %c0_41, %c0_42] : memref<3x16x384xf32, #tpu.memory_space<vmem>>, vector<1x16x384xf32>
      %42 = vector.shape_cast %41 : vector<1x16x384xf32> to vector<16x384xf32>
      %cst_43 = arith.constant dense<0.000000e+00> : vector<320x384xf32>
      %43 = tpu.matmul %34, %42, %cst_43 {dimension_numbers = #tpu.dot_dimension_numbers<[1], [0], [0], [1], [0, 0, 1, 1], [], []>} : vector<320x16xf32>, vector<16x384xf32>, vector<320x384xf32> -> vector<320x384xf32>
      %c1_44 = arith.constant 1 : index
      %c0_45 = arith.constant 0 : index
      %c0_46 = arith.constant 0 : index
      %44 = vector.load %arg4[%c1_44, %c0_45, %c0_46] : memref<3x320x384xf32, #tpu.memory_space<vmem>>, vector<1x320x384xf32>
      %45 = vector.shape_cast %44 : vector<1x320x384xf32> to vector<320x384xf32>
      %46 = vector.shape_cast %43 : vector<320x384xf32> to vector<1x320x384xf32>
      tpu.vector_store %arg4[%c1_44, %c0_45, %c0_46], %46 {strides = array<i32>} : memref<3x320x384xf32, #tpu.memory_space<vmem>>, vector<1x320x384xf32>,
      %c2_47 = arith.constant 2 : index
      %c0_48 = arith.constant 0 : index
      %c0_49 = arith.constant 0 : index
      %47 = vector.load %arg5[%c2_47, %c0_48, %c0_49] : memref<3x16x384xf32, #tpu.memory_space<vmem>>, vector<1x16x384xf32>
      %48 = vector.shape_cast %47 : vector<1x16x384xf32> to vector<16x384xf32>
      %cst_50 = arith.constant dense<0.000000e+00> : vector<320x384xf32>
      %49 = tpu.matmul %34, %48, %cst_50 {dimension_numbers = #tpu.dot_dimension_numbers<[1], [0], [0], [1], [0, 0, 1, 1], [], []>} : vector<320x16xf32>, vector<16x384xf32>, vector<320x384xf32> -> vector<320x384xf32>
      %c2_51 = arith.constant 2 : index
      %c0_52 = arith.constant 0 : index
      %c0_53 = arith.constant 0 : index
      %50 = vector.load %arg4[%c2_51, %c0_52, %c0_53] : memref<3x320x384xf32, #tpu.memory_space<vmem>>, vector<1x320x384xf32>
      %51 = vector.shape_cast %50 : vector<1x320x384xf32> to vector<320x384xf32>
      %52 = vector.shape_cast %49 : vector<320x384xf32> to vector<1x320x384xf32>
      tpu.vector_store %arg4[%c2_51, %c0_52, %c0_53], %52 {strides = array<i32>} : memref<3x320x384xf32, #tpu.memory_space<vmem>>, vector<1x320x384xf32>,
    } else {
    }
    return
  }
  func.func @transform_0(%arg0: i32) -> (i32, i32, i32) {
    %c0_i32 = arith.constant 0 : i32
    %c0_i32_0 = arith.constant 0 : i32
    %c0_i32_1 = arith.constant 0 : i32
    return %c0_i32, %c0_i32_0, %arg0 : i32, i32, i32
  }
  func.func @transform_1(%arg0: i32) -> (i32, i32) {
    %c0_i32 = arith.constant 0 : i32
    %c0_i32_0 = arith.constant 0 : i32
    return %arg0, %c0_i32 : i32, i32
  }
  func.func @transform_2(%arg0: i32) -> (i32, i32) {
    %c0_i32 = arith.constant 0 : i32
    %c0_i32_0 = arith.constant 0 : i32
    %c0_i32_1 = arith.constant 0 : i32
    return %c0_i32, %c0_i32_0 : i32, i32
  }
  func.func @transform_3(%arg0: i32) -> (i32, i32, i32) {
    %c0_i32 = arith.constant 0 : i32
    %c0_i32_0 = arith.constant 0 : i32
    %c0_i32_1 = arith.constant 0 : i32
    %c0_i32_2 = arith.constant 0 : i32
    return %c0_i32, %c0_i32_0, %c0_i32_1 : i32, i32, i32
  }
}

</mosaic_0001>

<bundles_post_ra>
// kernel: tpu_custom_call.1
= control target key start
LH: loop header
LB: loop body
LE: loop exit
PB: predicated region body
PF: predicated region fallthrough
CT: control target
= control target key end

     0   :  { %8 = vsyncpa [#allocation4], 0  ;;  %s4567_s0 = inlined_call_operand.hbm [shape: f32[3,16,16], index: 0, kind: input, shape index: {}]   ;;  %s4568_s1 = inlined_call_operand.hbm [shape: f32[16,384], index: 1, kind: input, shape index: {}]   ;;  %s4569_s2 = inlined_call_operand.vmem [shape: f32[320,16], index: 2, kind: input, shape index: {}]   ;;  %s4570_s3 = inlined_call_operand.hbm [shape: f32[3,320,384], index: 3, kind: output, shape index: {}]  }
   0x1   :  { %9 = vsyncpa [#allocation7], 0 }
   0x2   :  { %10 = vsyncpa [#allocation5], 0  ;;  %s3630_s12 = smov [#allocation3]   ;;  %s3558_s16 = scalar_lea.hbm %s4567_s0, 768 }
   0x3   :  { %s16_s13 = sshll.u32 %s3630_s12, 4  ;;  %p3559_p0 = scmp.ne.s32.totalorder %s4567_s0, %s3558_s16  ;;  %s17_s13 = int_to_ptr.vmem [resolvable:$true] %s16_s13 }
   0x4   :  { %p3562_p1 = scmp.lt.u32.totalorder %s3558_s16, %s4567_s0 }
   0x6   :  { %p3564_p2 = pnand %p3562_p1, %p3559_p0 }
   0x8   :  { %3567 = shalt.err (!%p3564_p2)
}
   0x9   :  { %s3568_s21 = scalar_lea.vmem %s17_s13, 768  ;;  %p3573_p4 = scmp.lt.s32.totalorder %s17_s13, %s17_s13 }
   0xa   :  { %p3569_p3 = scmp.ne.s32.totalorder %s17_s13, %s3568_s21  ;;  %p3574_p5 = scmp.lt.s32.totalorder %s3568_s21, %s3568_s21 }
   0xc   :  { %p3575_p6 = por %p3574_p5, %p3573_p4 }
   0xe   :  { %p3576_p7 = pnand %p3575_p6, %p3569_p3 }
  0x10   :  { %3579 = shalt.err (!%p3576_p7)
}
  0x11   :  { %s3631_s22 = smov 128   ;;  %s3632_s23 = smov 8  }
  0x12   :  { %22 = dma.hbm_to_vmem [thread:$0]  %s4567_s0, 768, %s17_s13, [#allocation4], %s3631_s22, %s3631_s22, %s3632_s23  }
  0x13   :  { %s3633_s26 = smov [#allocation6]   ;;  %s3580_s30 = scalar_lea.hbm %s4568_s1, 768 }
  0x14   :  { %s28_s27 = sshll.u32 %s3633_s26, 4  ;;  %p3581_p8 = scmp.ne.s32.totalorder %s4568_s1, %s3580_s30  ;;  %s29_s27 = int_to_ptr.vmem [resolvable:$true] %s28_s27 }
  0x15   :  { %p3584_p9 = scmp.lt.u32.totalorder %s3580_s30, %s4568_s1 }
  0x17   :  { %p3586_p10 = pnand %p3584_p9, %p3581_p8 }
  0x19   :  { %3589 = shalt.err (!%p3586_p10)
}
  0x1a   :  { %s3590_s8 = scalar_lea.vmem %s29_s27, 768  ;;  %p3595_p12 = scmp.lt.s32.totalorder %s29_s27, %s29_s27 }
  0x1b   :  { %p3591_p11 = scmp.ne.s32.totalorder %s29_s27, %s3590_s8  ;;  %p3596_p13 = scmp.lt.s32.totalorder %s3590_s8, %s3590_s8 }
  0x1d   :  { %p3597_p0 = por %p3596_p13, %p3595_p12 }
  0x1f   :  { %p3598_p1 = pnand %p3597_p0, %p3591_p11 }
  0x21   :  { %3601 = shalt.err (!%p3598_p1)
}
  0x22   :  { %s3634_s0 = smov 384   ;;  %s3635_s9 = smov 24  }
  0x23   :  { %34 = dma.hbm_to_vmem [thread:$0]  %s4568_s1, 768, %s29_s27, [#allocation7], %s3634_s0, %s3634_s0, %s3635_s9  }
  0x24   :  { %3624 = dma.done.wait [#allocation4], 768  }
  0x25   :  { %3625 = vsyncadd [#allocation4], 4294966528 }
  0x26   :  { %3626 = dma.done.wait [#allocation7], 768  }
  0x27   :  { %3627 = vsyncadd [#allocation7], 4294966528  ;;  %v3636_v0 = vmov 0.0   ;;  %v66_v1 = vld [vmem:[#allocation6 + $0x8] sm:$0xff]  ;;  %v69_v2 = vld [vmem:[#allocation6 + $0x20] sm:$0xff]  ;;  %vm79_vm0 = vcmask 130048  }
  0x28   :  { %150 = vmatprep.mubr.f32.mxu0 %v3636_v0  ;;  %v65_v3 = vld [vmem:[#allocation6] sm:$0xff]  ;;  %v3484_v4 = vpack.c.bf16 %v69_v2, %v66_v1  ;;  %v68_v5 = vld [vmem:[#allocation6 + $0x18] sm:$0xff]  ;;  %v77_v6 = vld [vmem:[#allocation3] sm:$0xff] }
  0x29   :  { %v3486_v7 = vpack.c.bf16 %v68_v5, %v65_v3  ;;  %v67_v8 = vld [vmem:[#allocation6 + $0x10] sm:$0xff]  ;;  %v70_v9 = vld [vmem:[#allocation6 + $0x28] sm:$0xff]  ;;  %3275 = vmatprep.mubr.msk.f32.mxu1 %vm79_vm0, %v77_v6  ;;  %v78_v11 = vld [vmem:[#allocation3 + $0x8] sm:$0xff] }
  0x2a   :  { %3485 = vmatprep.subr.bf16.mxu0 %v3484_v4  ;;  %v3488_v10 = vpack.c.bf16 %v70_v9, %v67_v8  ;;  %v258_v12 = vld [vmem:[#allocation3 + $0x10] sm:$0xff]  ;;  %v259_v13 = vld [vmem:[#allocation3 + $0x18] sm:$0xff]  ;;  %v438_v14 = vld [vmem:[#allocation3 + $0x20] sm:$0xff] }
  0x2b   :  { %3487 = vmatpush1.bf16.msra.mxu0 %v3486_v7  ;;  %v439_v15 = vld [vmem:[#allocation3 + $0x28] sm:$0xff]  ;;  %v3715_v31 = vld [vmem:[%s4569_s2] sm:$0xff]  ;;  %v3730_v37 = vld [vmem:[%s4569_s2 + $0x50] sm:$0xff] }
  0x2c   :  { %3497 = vmatprep.subr.bf16.mxu0 %v3488_v10  ;;  %3489 = vmatprep.subr.bf16.mxu1 %v3488_v10  ;;  %v3710_v29 = vld [vmem:[%s4569_s2 + $0x48] sm:$0xff]  ;;  %v3751_v44 = vld [vmem:[%s4569_s2 + $0x58] sm:$0xff]  ;;  %v3759_v47 = vld [vmem:[%s4569_s2 + $0x10] sm:$0xff] }
  0x2d   :  { %3491 = vmatpush3.bf16.msra.mxu1 %v3488_v10  ;;  %v3737_v39 = vld [vmem:[%s4569_s2 + $0x8] sm:$0xff]  ;;  %v3769_v49 = vld [vmem:[%s4569_s2 + $0x60] sm:$0xff]  ;;  %v3775_v50 = vld [vmem:[%s4569_s2 + $0x18] sm:$0xff] }
  0x2e   :  { %2881 = vmatmul.mubr.msk.f32.vlgmr.msra.gmra.mrb[0].mxu0 %vm79_vm0, %v77_v6  ;;  %3493 = vmatprep.subr.bf16.mxu1 %v3484_v4  ;;  %v3785_v51 = vld [vmem:[%s4569_s2 + $0x68] sm:$0xff]  ;;  %v3791_v52 = vld [vmem:[%s4569_s2 + $0x20] sm:$0xff]  ;;  %v3801_v53 = vld [vmem:[%s4569_s2 + $0x70] sm:$0xff] }
  0x2f   :  { %156 = vmatprep.mubr.f32.mxu0 %v3636_v0  ;;  %3499 = vmatpush3.bf16.msra.mxu0 %v3488_v10  ;;  %v3807_v54 = vld [vmem:[%s4569_s2 + $0x28] sm:$0xff]  ;;  %v3817_v55 = vld [vmem:[%s4569_s2 + $0x78] sm:$0xff]  ;;  %v3823_v56 = vld [vmem:[%s4569_s2 + $0x30] sm:$0xff] }
  0x30   :  { %3276 = vmatmul.mubr.msk.f32.vlgmr.msra.gmra.mrb[0].mxu1 %vm79_vm0, %v78_v11  ;;  %3501 = vmatprep.subr.bf16.mxu0 %v3484_v4  ;;  %v3833_v57 = vld [vmem:[%s4569_s2 + $0x80] sm:$0xff]  ;;  %v3839_v58 = vld [vmem:[%s4569_s2 + $0x38] sm:$0xff]  ;;  %v3849_v59 = vld [vmem:[%s4569_s2 + $0x88] sm:$0xff] }
  0x31   :  { %3495 = vmatpush1.bf16.msra.mxu1 %v3486_v7  ;;  %330 = vmatprep.mubr.f32.mxu1 %v3636_v0  ;;  %v3855_v60 = vld [vmem:[%s4569_s2 + $0x40] sm:$0xff]  ;;  %v3865_v61 = vld [vmem:[%s4569_s2 + $0x90] sm:$0xff]  ;;  %v3877_v62 = vld [vmem:[%s4569_s2 + $0x98] sm:$0xff] }
  0x32   :  { %2882 = vmatmul.mubr.msk.f32.gmra.mrb[2].mxu0 %vm79_vm0, %v78_v11  ;;  %3505 = vmatprep.subr.bf16.mxu1 %v3488_v10  ;;  %v3891_v63 = vld [vmem:[%s4569_s2 + $0xa0] sm:$0xff]  ;;  %v3903_v1 = vld [vmem:[%s4569_s2 + $0xa8] sm:$0xff]  ;;  %v3915_v2 = vld [vmem:[%s4569_s2 + $0xb0] sm:$0xff] }
  0x33   :  { %3282 = vmatprep.mubr.msk.f32.mxu0 %vm79_vm0, %v258_v12  ;;  %v3927_v3 = vld [vmem:[%s4569_s2 + $0xb8] sm:$0xff]  ;;  %v3939_v4 = vld [vmem:[%s4569_s2 + $0xc0] sm:$0xff]  ;;  %v3951_v5 = vld [vmem:[%s4569_s2 + $0xc8] sm:$0xff] }
  0x34   :  { %2885 = vmatmul.mubr.msk.f32.vlgmr.msra.gmra.mrb[2].mxu1 %vm79_vm0, %v258_v12  ;;  %v3963_v6 = vld [vmem:[%s4569_s2 + $0xd0] sm:$0xff]  ;;  %v3987_v8 = vld [vmem:[%s4569_s2 + $0xe0] sm:$0xff]  ;;  %v3999_v9 = vld [vmem:[%s4569_s2 + $0xe8] sm:$0xff] }
  0x35   :  { %336 = vmatprep.mubr.f32.mxu1 %v3636_v0  ;;  %3507 = vmatpush3.bf16.msra.mxu1 %v3488_v10  ;;  %v4011_v10 = vld [vmem:[%s4569_s2 + $0xf0] sm:$0xff]  ;;  %v4023_v11 = vld [vmem:[%s4569_s2 + $0xf8] sm:$0xff]  ;;  %v4035_v12 = vld [vmem:[%s4569_s2 + $0x100] sm:$0xff] }
  0x36   :  { %3283 = vmatmul.mubr.msk.f32.vlgmr.msra.gmra.mrb[4].mxu0 %vm79_vm0, %v259_v13 }
  0x37   :  { %3503 = vmatpush1.bf16.msra.mxu0 %v3486_v7  ;;  %510 = vmatprep.mubr.f32.mxu0 %v3636_v0  ;;  %v3975_v7 = vld [vmem:[%s4569_s2 + $0xd8] sm:$0xff] }
  0x38   :  { %2886 = vmatmul.mubr.msk.f32.gmra.mrb[4].mxu1 %vm79_vm0, %v259_v13  ;;  %v4047_v13 = vld [vmem:[%s4569_s2 + $0x108] sm:$0xff] }
  0x39   :  { %3289 = vmatprep.mubr.msk.f32.mxu1 %vm79_vm0, %v438_v14 }
  0x3a   :  { %2889 = vmatmul.mubr.msk.f32.vlgmr.msra.gmra.mrb[6].mxu0 %vm79_vm0, %v438_v14  ;;  %v4059_v14 = vld [vmem:[%s4569_s2 + $0x110] sm:$0xff] }
  0x3b   :  { %516 = vmatprep.mubr.f32.mxu0 %v3636_v0 }
  0x3c   :  { %3290 = vmatmul.mubr.msk.f32.vlgmr.msra.gmra.mrb[6].mxu1 %vm79_vm0, %v439_v15 }
  0x3d   :  { %897 = vmatprep.mubr.f32.mxu1 %v3636_v0 }
  0x3e   :  { %2890 = vmatmul.mubr.msk.f32.gmra.mrb[8].mxu0 %vm79_vm0, %v439_v15  ;;  %v4071_v15 = vld [vmem:[%s4569_s2 + $0x118] sm:$0xff] }
  0x3f   :  { %843 = vmatprep.mubr.f32.mxu0 %v3636_v0 }
 0x101   :  { %v152_v16 = vpop.f32.mrb[0].mxu0 }
 0x102   :  { %v154_v17 = vpop.f32.mrb[1].mxu0 }
 0x103   :  { %v3277_v18 = vpop.f32.mrb[0].mxu1 }
 0x104   :  { %v229_v19 = vpop.f32.mrb[1].mxu1 }
 0x105   :  { %v158_v20 = vpop.f32.mrb[2].mxu0  ;;  %v3512_v21 = vpack.c.bf16 %v3277_v18, %v229_v19  ;;  %v4102_v18 = vld [vmem:[%s4569_s2 + $0x130] sm:$0xff]  ;;  %v4109_v19 = vld [vmem:[%s4569_s2 + $0x138] sm:$0xff] }
 0x106   :  { %v3510_v22 = vpack.c.bf16 %v158_v20, %v152_v16  ;;  %v160_v23 = vpop.f32.mrb[3].mxu0  ;;  %v4083_v16 = vld [vmem:[%s4569_s2 + $0x120] sm:$0xff] }
 0x107   :  { %v3508_v24 = vpack.c.bf16 %v160_v23, %v154_v17  ;;  %v3705_v25 = vpop.f32.mrb[2].mxu1  ;;  %v4094_v17 = vld [vmem:[%s4569_s2 + $0x128] sm:$0xff] }
 0x108   :  { %v334_v26 = vpop.f32.mrb[3].mxu1 }
 0x109   :  { %v3284_v27 = vpop.f32.mrb[4].mxu0  ;;  %3509 = vmatprep.subr.bf16.mxu0 %v3508_v24  ;;  %3532 = vmatprep.subr.bf16.mxu1 %v3508_v24 }
 0x10a   :  { %v409_v28 = vpop.f32.mrb[5].mxu0  ;;  %3511 = vmatpush1.bf16.msra.mxu0 %v3510_v22  ;;  %3533 = vmatpush1.bf16.msra.mxu1 %v3510_v22 }
 0x10b   :  { %v3520_v30 = vpack.c.bf16 %v3284_v27, %v409_v28  ;;  %3513 = vmatprep.subr.bf16.mxu0 %v3512_v21  ;;  %v3717_v32 = vpop.f32.mrb[4].mxu1 }
 0x10c   :  { %v3518_v33 = vpack.c.bf16 %v3717_v32, %v3705_v25  ;;  %v340_v34 = vpop.f32.mrb[5].mxu1 }
 0x10d   :  { %2902 = vmatmul.mubr.msk.f32.vlgmr.msra.gmra.mrb[8].mxu1 %vm79_vm0, %v3710_v29  ;;  %3521 = vmatprep.subr.bf16.mxu1 %v3520_v30  ;;  %v3516_v35 = vpack.c.bf16 %v340_v34, %v334_v26  ;;  %v3723_v36 = vpop.f32.mrb[6].mxu0 }
 0x10e   :  { %3523 = vmatpush3.bf16.msra.mxu1 %v3520_v30  ;;  %2893 = vmatmul.mubr.msk.f32.vlgmr.msra.gmra.mrb[10].mxu0 %vm79_vm0, %v3715_v31  ;;  %v514_v38 = vpop.f32.mrb[7].mxu0 }
 0x10f   :  { %903 = vmatprep.mubr.f32.mxu1 %v3636_v0  ;;  %849 = vmatprep.mubr.f32.mxu0 %v3636_v0  ;;  %v3291_v40 = vpop.f32.mrb[6].mxu1 }
 0x110   :  { %3515 = vmatpush3.bf16.msra.mxu0 %v3512_v21  ;;  %v589_v41 = vpop.f32.mrb[7].mxu1 }
 0x111   :  { %2903 = vmatmul.mubr.msk.f32.gmra.mrb[10].mxu1 %vm79_vm0, %v3730_v37  ;;  %3517 = vmatprep.subr.bf16.mxu0 %v3516_v35  ;;  %v3741_v42 = vpop.f32.mrb[8].mxu0  ;;  %v3743_v43 = vpack.c.bf16 %v3291_v40, %v589_v41 }
 0x112   :  { %2894 = vmatmul.mubr.msk.f32.gmra.mrb[12].mxu0 %vm79_vm0, %v3737_v39  ;;  %909 = vmatprep.mubr.f32.mxu1 %v3636_v0  ;;  %v3526_v45 = vpack.c.bf16 %v3741_v42, %v3723_v36  ;;  %v520_v46 = vpop.f32.mrb[9].mxu0 }
 0x113   :  { %855 = vmatprep.mubr.f32.mxu0 %v3636_v0  ;;  %v3524_v48 = vpack.c.bf16 %v520_v46, %v514_v38 }
 0x115   :  { %2904 = vmatmul.mubr.msk.f32.gmra.mrb[12].mxu1 %vm79_vm0, %v3751_v44  ;;  %3525 = vmatprep.subr.bf16.mxu1 %v3524_v48 }
 0x116   :  { %2895 = vmatmul.mubr.msk.f32.gmra.mrb[14].mxu0 %vm79_vm0, %v3759_v47  ;;  %915 = vmatprep.mubr.f32.mxu1 %v3636_v0 }
 0x117   :  { %861 = vmatprep.mubr.f32.mxu0 %v3636_v0 }
 0x119   :  { %2905 = vmatmul.mubr.msk.f32.gmra.mrb[14].mxu1 %vm79_vm0, %v3769_v49 }
 0x11a   :  { %2896 = vmatmul.mubr.msk.f32.gmra.mrb[16].mxu0 %vm79_vm0, %v3775_v50  ;;  %921 = vmatprep.mubr.f32.mxu1 %v3636_v0 }
 0x11b   :  { %867 = vmatprep.mubr.f32.mxu0 %v3636_v0 }
 0x11d   :  { %2906 = vmatmul.mubr.msk.f32.gmra.mrb[16].mxu1 %vm79_vm0, %v3785_v51 }
 0x11e   :  { %2897 = vmatmul.mubr.msk.f32.gmra.mrb[18].mxu0 %vm79_vm0, %v3791_v52  ;;  %927 = vmatprep.mubr.f32.mxu1 %v3636_v0 }
 0x11f   :  { %873 = vmatprep.mubr.f32.mxu0 %v3636_v0 }
 0x121   :  { %2907 = vmatmul.mubr.msk.f32.gmra.mrb[18].mxu1 %vm79_vm0, %v3801_v53 }
 0x122   :  { %2898 = vmatmul.mubr.msk.f32.gmra.mrb[20].mxu0 %vm79_vm0, %v3807_v54  ;;  %933 = vmatprep.mubr.f32.mxu1 %v3636_v0 }
 0x123   :  { %879 = vmatprep.mubr.f32.mxu0 %v3636_v0 }
 0x125   :  { %2908 = vmatmul.mubr.msk.f32.gmra.mrb[20].mxu1 %vm79_vm0, %v3817_v55 }
 0x126   :  { %2899 = vmatmul.mubr.msk.f32.gmra.mrb[22].mxu0 %vm79_vm0, %v3823_v56  ;;  %939 = vmatprep.mubr.f32.mxu1 %v3636_v0 }
 0x127   :  { %885 = vmatprep.mubr.f32.mxu0 %v3636_v0 }
 0x129   :  { %2909 = vmatmul.mubr.msk.f32.gmra.mrb[22].mxu1 %vm79_vm0, %v3833_v57 }
 0x12a   :  { %2900 = vmatmul.mubr.msk.f32.gmra.mrb[24].mxu0 %vm79_vm0, %v3839_v58  ;;  %945 = vmatprep.mubr.f32.mxu1 %v3636_v0 }
 0x12b   :  { %891 = vmatprep.mubr.f32.mxu0 %v3636_v0 }
 0x12d   :  { %2910 = vmatmul.mubr.msk.f32.gmra.mrb[24].mxu1 %vm79_vm0, %v3849_v59 }
 0x12e   :  { %2901 = vmatmul.mubr.msk.f32.gmra.mrb[26].mxu0 %vm79_vm0, %v3855_v60  ;;  %951 = vmatprep.mubr.f32.mxu1 %v3636_v0 }
 0x12f   :  { %3296 = vmatprep.mubr.msk.f32.mxu0 %vm79_vm0, %v3715_v31 }
 0x131   :  { %2911 = vmatmul.mubr.msk.f32.gmra.mrb[26].mxu1 %vm79_vm0, %v3865_v61 }
 0x132   :  { %957 = vmatprep.mubr.f32.mxu1 %v3636_v0  ;;  %3297 = vmatmul.mubr.msk.f32.vlgmr.msra.gmra.mrb[28].mxu0 %vm79_vm0, %v3737_v39 }
 0x133   :  { %3519 = vmatpush1.bf16.msra.mxu0 %v3518_v33  ;;  %3299 = vmatprep.mubr.msk.f32.mxu0 %vm79_vm0, %v3759_v47 }
 0x134   :  { %3529 = vmatprep.subr.bf16.mxu0 %v3743_v43 }
 0x135   :  { %2912 = vmatmul.mubr.msk.f32.gmra.mrb[28].mxu1 %vm79_vm0, %v3877_v62 }
 0x136   :  { %963 = vmatprep.mubr.f32.mxu1 %v3636_v0  ;;  %3300 = vmatmul.mubr.msk.f32.gmra.mrb[30].mxu0 %vm79_vm0, %v3775_v50 }
 0x137   :  { %3302 = vmatprep.mubr.msk.f32.mxu0 %vm79_vm0, %v3791_v52 }
 0x139   :  { %2913 = vmatmul.mubr.msk.f32.gmra.mrb[30].mxu1 %vm79_vm0, %v3891_v63 }
 0x13a   :  { %969 = vmatprep.mubr.f32.mxu1 %v3636_v0  ;;  %3303 = vmatmul.mubr.msk.f32.gmra.mrb[32].mxu0 %vm79_vm0, %v3807_v54 }
 0x13b   :  { %3305 = vmatprep.mubr.msk.f32.mxu0 %vm79_vm0, %v3823_v56 }
 0x13d   :  { %2914 = vmatmul.mubr.msk.f32.gmra.mrb[32].mxu1 %vm79_vm0, %v3903_v1 }
 0x13e   :  { %975 = vmatprep.mubr.f32.mxu1 %v3636_v0  ;;  %3306 = vmatmul.mubr.msk.f32.gmra.mrb[34].mxu0 %vm79_vm0, %v3839_v58 }
 0x13f   :  { %3308 = vmatprep.mubr.msk.f32.mxu0 %vm79_vm0, %v3855_v60 }
 0x141   :  { %2915 = vmatmul.mubr.msk.f32.gmra.mrb[34].mxu1 %vm79_vm0, %v3915_v2 }
 0x142   :  { %981 = vmatprep.mubr.f32.mxu1 %v3636_v0  ;;  %3309 = vmatmul.mubr.msk.f32.gmra.mrb[36].mxu0 %vm79_vm0, %v3710_v29 }
 0x143   :  { %3311 = vmatprep.mubr.msk.f32.mxu0 %vm79_vm0, %v3730_v37 }
 0x145   :  { %2916 = vmatmul.mubr.msk.f32.gmra.mrb[36].mxu1 %vm79_vm0, %v3927_v3 }
 0x146   :  { %987 = vmatprep.mubr.f32.mxu1 %v3636_v0  ;;  %3312 = vmatmul.mubr.msk.f32.gmra.mrb[38].mxu0 %vm79_vm0, %v3751_v44 }
 0x147   :  { %3314 = vmatprep.mubr.msk.f32.mxu0 %vm79_vm0, %v3769_v49 }
 0x149   :  { %2917 = vmatmul.mubr.msk.f32.gmra.mrb[38].mxu1 %vm79_vm0, %v3939_v4 }
 0x14a   :  { %993 = vmatprep.mubr.f32.mxu1 %v3636_v0  ;;  %3315 = vmatmul.mubr.msk.f32.gmra.mrb[40].mxu0 %vm79_vm0, %v3785_v51 }
 0x14b   :  { %3317 = vmatprep.mubr.msk.f32.mxu0 %vm79_vm0, %v3801_v53 }
 0x14d   :  { %2918 = vmatmul.mubr.msk.f32.gmra.mrb[40].mxu1 %vm79_vm0, %v3951_v5 }
 0x14e   :  { %999 = vmatprep.mubr.f32.mxu1 %v3636_v0  ;;  %3318 = vmatmul.mubr.msk.f32.gmra.mrb[42].mxu0 %vm79_vm0, %v3817_v55 }
 0x14f   :  { %3320 = vmatprep.mubr.msk.f32.mxu0 %vm79_vm0, %v3833_v57 }
 0x151   :  { %2919 = vmatmul.mubr.msk.f32.gmra.mrb[42].mxu1 %vm79_vm0, %v3963_v6 }
 0x152   :  { %1005 = vmatprep.mubr.f32.mxu1 %v3636_v0  ;;  %3321 = vmatmul.mubr.msk.f32.gmra.mrb[44].mxu0 %vm79_vm0, %v3849_v59 }
 0x153   :  { %3323 = vmatprep.mubr.msk.f32.mxu0 %vm79_vm0, %v3865_v61 }
 0x155   :  { %2920 = vmatmul.mubr.msk.f32.gmra.mrb[44].mxu1 %vm79_vm0, %v3975_v7 }
 0x156   :  { %1011 = vmatprep.mubr.f32.mxu1 %v3636_v0  ;;  %3324 = vmatmul.mubr.msk.f32.gmra.mrb[46].mxu0 %vm79_vm0, %v3877_v62 }
 0x157   :  { %3326 = vmatprep.mubr.msk.f32.mxu0 %vm79_vm0, %v3891_v63 }
 0x159   :  { %2921 = vmatmul.mubr.msk.f32.gmra.mrb[46].mxu1 %vm79_vm0, %v3987_v8 }
 0x15a   :  { %1017 = vmatprep.mubr.f32.mxu1 %v3636_v0  ;;  %3327 = vmatmul.mubr.msk.f32.gmra.mrb[48].mxu0 %vm79_vm0, %v3903_v1 }
 0x15b   :  { %3329 = vmatprep.mubr.msk.f32.mxu0 %vm79_vm0, %v3915_v2 }
 0x15d   :  { %2922 = vmatmul.mubr.msk.f32.gmra.mrb[48].mxu1 %vm79_vm0, %v3999_v9 }
 0x15e   :  { %1023 = vmatprep.mubr.f32.mxu1 %v3636_v0  ;;  %3330 = vmatmul.mubr.msk.f32.gmra.mrb[50].mxu0 %vm79_vm0, %v3927_v3 }
 0x15f   :  { %3332 = vmatprep.mubr.msk.f32.mxu0 %vm79_vm0, %v3939_v4 }
 0x161   :  { %2923 = vmatmul.mubr.msk.f32.gmra.mrb[50].mxu1 %vm79_vm0, %v4011_v10 }
 0x162   :  { %1029 = vmatprep.mubr.f32.mxu1 %v3636_v0  ;;  %3333 = vmatmul.mubr.msk.f32.gmra.mrb[52].mxu0 %vm79_vm0, %v3951_v5 }
 0x163   :  { %3335 = vmatprep.mubr.msk.f32.mxu0 %vm79_vm0, %v3963_v6 }
 0x165   :  { %2924 = vmatmul.mubr.msk.f32.gmra.mrb[52].mxu1 %vm79_vm0, %v4023_v11 }
 0x166   :  { %1035 = vmatprep.mubr.f32.mxu1 %v3636_v0  ;;  %3336 = vmatmul.mubr.msk.f32.gmra.mrb[54].mxu0 %vm79_vm0, %v3975_v7 }
 0x167   :  { %3338 = vmatprep.mubr.msk.f32.mxu0 %vm79_vm0, %v3987_v8 }
 0x169   :  { %2925 = vmatmul.mubr.msk.f32.gmra.mrb[54].mxu1 %vm79_vm0, %v4035_v12 }
 0x16a   :  { %1041 = vmatprep.mubr.f32.mxu1 %v3636_v0  ;;  %3339 = vmatmul.mubr.msk.f32.gmra.mrb[56].mxu0 %vm79_vm0, %v3999_v9 }
 0x16b   :  { %3341 = vmatprep.mubr.msk.f32.mxu0 %vm79_vm0, %v4011_v10 }
 0x16d   :  { %2926 = vmatmul.mubr.msk.f32.gmra.mrb[56].mxu1 %vm79_vm0, %v4047_v13 }
 0x16e   :  { %1047 = vmatprep.mubr.f32.mxu1 %v3636_v0  ;;  %3342 = vmatmul.mubr.msk.f32.gmra.mrb[58].mxu0 %vm79_vm0, %v4023_v11 }
 0x16f   :  { %3344 = vmatprep.mubr.msk.f32.mxu0 %vm79_vm0, %v4035_v12 }
 0x171   :  { %2927 = vmatmul.mubr.msk.f32.gmra.mrb[58].mxu1 %vm79_vm0, %v4059_v14 }
 0x172   :  { %1053 = vmatprep.mubr.f32.mxu1 %v3636_v0  ;;  %3345 = vmatmul.mubr.msk.f32.gmra.mrb[60].mxu0 %vm79_vm0, %v4047_v13 }
 0x173   :  { %3347 = vmatprep.mubr.msk.f32.mxu0 %vm79_vm0, %v4059_v14 }
 0x175   :  { %2928 = vmatmul.mubr.msk.f32.gmra.mrb[60].mxu1 %vm79_vm0, %v4071_v15 }
 0x176   :  { %1059 = vmatprep.mubr.f32.mxu1 %v3636_v0  ;;  %3348 = vmatmul.mubr.msk.f32.gmra.mrb[62].mxu0 %vm79_vm0, %v4071_v15 }
 0x177   :  { %3350 = vmatprep.mubr.msk.f32.mxu0 %vm79_vm0, %v4083_v16 }
 0x179   :  { %2929 = vmatmul.mubr.msk.f32.gmra.mrb[62].mxu1 %vm79_vm0, %v4083_v16 }
 0x17a   :  { %1065 = vmatprep.mubr.f32.mxu1 %v3636_v0  ;;  %3351 = vmatmul.mubr.msk.f32.gmra.mrb[64].mxu0 %vm79_vm0, %v4094_v17 }
 0x17b   :  { %3353 = vmatprep.mubr.msk.f32.mxu0 %vm79_vm0, %v4102_v18 }
 0x17d   :  { %2930 = vmatmul.mubr.msk.f32.gmra.mrb[64].mxu1 %vm79_vm0, %v4094_v17 }
 0x17e   :  { %1071 = vmatprep.mubr.f32.mxu1 %v3636_v0  ;;  %3354 = vmatmul.mubr.msk.f32.gmra.mrb[66].mxu0 %vm79_vm0, %v4109_v19 }
 0x17f   :  { %1539 = vmatprep.mubr.f32.mxu0 %v3636_v0 }
 0x181   :  { %2931 = vmatmul.mubr.msk.f32.gmra.mrb[66].mxu1 %vm79_vm0, %v4102_v18 }
 0x182   :  { %1077 = vmatprep.mubr.f32.mxu1 %v3636_v0  ;;  %2973 = vmatmul.mubr.msk.f32.vlgmr.msra.gmra.mrb[68].mxu0 %vm79_vm0, %v3715_v31 }
 0x183   :  { %3531 = vmatpush3.bf16.msra.mxu0 %v3743_v43  ;;  %1545 = vmatprep.mubr.f32.mxu0 %v3636_v0 }
 0x185   :  { %2932 = vmatmul.mubr.msk.f32.gmra.mrb[68].mxu1 %vm79_vm0, %v4109_v19 }
 0x186   :  { %3360 = vmatprep.mubr.msk.f32.mxu1 %vm79_vm0, %v3715_v31  ;;  %2974 = vmatmul.mubr.msk.f32.gmra.mrb[70].mxu0 %vm79_vm0, %v3737_v39 }
 0x187   :  { %1551 = vmatprep.mubr.f32.mxu0 %v3636_v0 }
 0x189   :  { %3361 = vmatmul.mubr.msk.f32.vlgmr.msra.gmra.mrb[70].mxu1 %vm79_vm0, %v3737_v39 }
 0x18a   :  { %3527 = vmatpush1.bf16.msra.mxu1 %v3526_v45  ;;  %3363 = vmatprep.mubr.msk.f32.mxu1 %vm79_vm0, %v3759_v47 }
 0x18b   :  { %2975 = vmatmul.mubr.msk.f32.gmra.mrb[72].mxu0 %vm79_vm0, %v3759_v47 }
 0x18c   :  { %1557 = vmatprep.mubr.f32.mxu0 %v3636_v0 }
 0x18d   :  { %3364 = vmatmul.mubr.msk.f32.gmra.mrb[72].mxu1 %vm79_vm0, %v3775_v50 }
 0x18e   :  { %3366 = vmatprep.mubr.msk.f32.mxu1 %vm79_vm0, %v3791_v52 }
 0x18f   :  { %2976 = vmatmul.mubr.msk.f32.gmra.mrb[74].mxu0 %vm79_vm0, %v3775_v50 }
 0x190   :  { %1563 = vmatprep.mubr.f32.mxu0 %v3636_v0 }
 0x191   :  { %3367 = vmatmul.mubr.msk.f32.gmra.mrb[74].mxu1 %vm79_vm0, %v3807_v54 }
 0x192   :  { %3369 = vmatprep.mubr.msk.f32.mxu1 %vm79_vm0, %v3823_v56 }
 0x193   :  { %2977 = vmatmul.mubr.msk.f32.gmra.mrb[76].mxu0 %vm79_vm0, %v3791_v52 }
 0x194   :  { %1569 = vmatprep.mubr.f32.mxu0 %v3636_v0 }
 0x195   :  { %3370 = vmatmul.mubr.msk.f32.gmra.mrb[76].mxu1 %vm79_vm0, %v3839_v58 }
 0x196   :  { %3372 = vmatprep.mubr.msk.f32.mxu1 %vm79_vm0, %v3855_v60 }
 0x197   :  { %2978 = vmatmul.mubr.msk.f32.gmra.mrb[78].mxu0 %vm79_vm0, %v3807_v54 }
 0x198   :  { %1575 = vmatprep.mubr.f32.mxu0 %v3636_v0 }
 0x199   :  { %3373 = vmatmul.mubr.msk.f32.gmra.mrb[78].mxu1 %vm79_vm0, %v3710_v29 }
 0x19a   :  { %3375 = vmatprep.mubr.msk.f32.mxu1 %vm79_vm0, %v3730_v37 }
 0x19b   :  { %2979 = vmatmul.mubr.msk.f32.gmra.mrb[80].mxu0 %vm79_vm0, %v3823_v56 }
 0x19c   :  { %1581 = vmatprep.mubr.f32.mxu0 %v3636_v0 }
 0x19d   :  { %3376 = vmatmul.mubr.msk.f32.gmra.mrb[80].mxu1 %vm79_vm0, %v3751_v44 }
 0x19e   :  { %3378 = vmatprep.mubr.msk.f32.mxu1 %vm79_vm0, %v3769_v49 }
 0x19f   :  { %2980 = vmatmul.mubr.msk.f32.gmra.mrb[82].mxu0 %vm79_vm0, %v3839_v58 }
 0x1a0   :  { %1587 = vmatprep.mubr.f32.mxu0 %v3636_v0 }
 0x1a1   :  { %3379 = vmatmul.mubr.msk.f32.gmra.mrb[82].mxu1 %vm79_vm0, %v3785_v51 }
 0x1a2   :  { %3381 = vmatprep.mubr.msk.f32.mxu1 %vm79_vm0, %v3801_v53 }
 0x1a3   :  { %2981 = vmatmul.mubr.msk.f32.gmra.mrb[84].mxu0 %vm79_vm0, %v3855_v60 }
 0x1a4   :  { %1593 = vmatprep.mubr.f32.mxu0 %v3636_v0 }
 0x1a5   :  { %3382 = vmatmul.mubr.msk.f32.gmra.mrb[84].mxu1 %vm79_vm0, %v3817_v55 }
 0x1a6   :  { %3384 = vmatprep.mubr.msk.f32.mxu1 %vm79_vm0, %v3833_v57 }
 0x1a7   :  { %2982 = vmatmul.mubr.msk.f32.gmra.mrb[86].mxu0 %vm79_vm0, %v3710_v29 }
 0x1a8   :  { %1599 = vmatprep.mubr.f32.mxu0 %v3636_v0 }
 0x1a9   :  { %3385 = vmatmul.mubr.msk.f32.gmra.mrb[86].mxu1 %vm79_vm0, %v3849_v59 }
 0x1aa   :  { %3387 = vmatprep.mubr.msk.f32.mxu1 %vm79_vm0, %v3865_v61 }
 0x1ab   :  { %2983 = vmatmul.mubr.msk.f32.gmra.mrb[88].mxu0 %vm79_vm0, %v3730_v37 }
 0x1ac   :  { %1605 = vmatprep.mubr.f32.mxu0 %v3636_v0 }
 0x1ad   :  { %3388 = vmatmul.mubr.msk.f32.gmra.mrb[88].mxu1 %vm79_vm0, %v3877_v62 }
 0x1ae   :  { %3390 = vmatprep.mubr.msk.f32.mxu1 %vm79_vm0, %v3891_v63 }
 0x1af   :  { %2984 = vmatmul.mubr.msk.f32.gmra.mrb[90].mxu0 %vm79_vm0, %v3751_v44 }
 0x1b0   :  { %1611 = vmatprep.mubr.f32.mxu0 %v3636_v0 }
 0x1b1   :  { %3391 = vmatmul.mubr.msk.f32.gmra.mrb[90].mxu1 %vm79_vm0, %v3903_v1 }
 0x1b2   :  { %3393 = vmatprep.mubr.msk.f32.mxu1 %vm79_vm0, %v3915_v2 }
 0x1b3   :  { %2985 = vmatmul.mubr.msk.f32.gmra.mrb[92].mxu0 %vm79_vm0, %v3769_v49 }
 0x1b4   :  { %1617 = vmatprep.mubr.f32.mxu0 %v3636_v0 }
 0x1b5   :  { %3394 = vmatmul.mubr.msk.f32.gmra.mrb[92].mxu1 %vm79_vm0, %v3927_v3 }
 0x1b6   :  { %3396 = vmatprep.mubr.msk.f32.mxu1 %vm79_vm0, %v3939_v4 }
 0x1b7   :  { %2986 = vmatmul.mubr.msk.f32.gmra.mrb[94].mxu0 %vm79_vm0, %v3785_v51 }
 0x1b8   :  { %1623 = vmatprep.mubr.f32.mxu0 %v3636_v0 }
 0x1b9   :  { %3397 = vmatmul.mubr.msk.f32.gmra.mrb[94].mxu1 %vm79_vm0, %v3951_v5 }
 0x1ba   :  { %3399 = vmatprep.mubr.msk.f32.mxu1 %vm79_vm0, %v3963_v6 }
 0x1bb   :  { %2987 = vmatmul.mubr.msk.f32.gmra.mrb[96].mxu0 %vm79_vm0, %v3801_v53 }
 0x1bc   :  { %1629 = vmatprep.mubr.f32.mxu0 %v3636_v0 }
 0x1bd   :  { %3400 = vmatmul.mubr.msk.f32.gmra.mrb[96].mxu1 %vm79_vm0, %v3975_v7 }
 0x1be   :  { %3402 = vmatprep.mubr.msk.f32.mxu1 %vm79_vm0, %v3987_v8 }
 0x1bf   :  { %2988 = vmatmul.mubr.msk.f32.gmra.mrb[98].mxu0 %vm79_vm0, %v3817_v55 }
 0x1c0   :  { %1635 = vmatprep.mubr.f32.mxu0 %v3636_v0 }
 0x1c1   :  { %3403 = vmatmul.mubr.msk.f32.gmra.mrb[98].mxu1 %vm79_vm0, %v3999_v9 }
 0x1c2   :  { %3405 = vmatprep.mubr.msk.f32.mxu1 %vm79_vm0, %v4011_v10 }
 0x1c3   :  { %2989 = vmatmul.mubr.msk.f32.gmra.mrb[100].mxu0 %vm79_vm0, %v3833_v57 }
 0x1c4   :  { %1641 = vmatprep.mubr.f32.mxu0 %v3636_v0 }
 0x1c5   :  { %3406 = vmatmul.mubr.msk.f32.gmra.mrb[100].mxu1 %vm79_vm0, %v4023_v11 }
 0x1c6   :  { %3408 = vmatprep.mubr.msk.f32.mxu1 %vm79_vm0, %v4035_v12 }
 0x1c7   :  { %2990 = vmatmul.mubr.msk.f32.gmra.mrb[102].mxu0 %vm79_vm0, %v3849_v59 }
 0x1c8   :  { %1647 = vmatprep.mubr.f32.mxu0 %v3636_v0 }
 0x1c9   :  { %3409 = vmatmul.mubr.msk.f32.gmra.mrb[102].mxu1 %vm79_vm0, %v4047_v13 }
 0x1ca   :  { %3411 = vmatprep.mubr.msk.f32.mxu1 %vm79_vm0, %v4059_v14 }
 0x1cb   :  { %2991 = vmatmul.mubr.msk.f32.gmra.mrb[104].mxu0 %vm79_vm0, %v3865_v61 }
 0x1cc   :  { %1653 = vmatprep.mubr.f32.mxu0 %v3636_v0 }
 0x1cd   :  { %3412 = vmatmul.mubr.msk.f32.gmra.mrb[104].mxu1 %vm79_vm0, %v4071_v15 }
 0x1ce   :  { %3414 = vmatprep.mubr.msk.f32.mxu1 %vm79_vm0, %v4083_v16 }
 0x1cf   :  { %2992 = vmatmul.mubr.msk.f32.gmra.mrb[106].mxu0 %vm79_vm0, %v3877_v62 }
 0x1d0   :  { %1659 = vmatprep.mubr.f32.mxu0 %v3636_v0 }
 0x1d1   :  { %3415 = vmatmul.mubr.msk.f32.gmra.mrb[106].mxu1 %vm79_vm0, %v4094_v17 }
 0x1d2   :  { %3417 = vmatprep.mubr.msk.f32.mxu1 %vm79_vm0, %v4102_v18 }
 0x1d3   :  { %2993 = vmatmul.mubr.msk.f32.gmra.mrb[108].mxu0 %vm79_vm0, %v3891_v63 }
 0x1d4   :  { %1665 = vmatprep.mubr.f32.mxu0 %v3636_v0 }
 0x1d5   :  { %3418 = vmatmul.mubr.msk.f32.gmra.mrb[108].mxu1 %vm79_vm0, %v4109_v19 }
 0x1d6   :  { %2236 = vmatprep.mubr.f32.mxu1 %v3636_v0 }
 0x1d7   :  { %2994 = vmatmul.mubr.msk.f32.gmra.mrb[110].mxu0 %vm79_vm0, %v3903_v1 }
 0x1d8   :  { %1671 = vmatprep.mubr.f32.mxu0 %v3636_v0 }
 0x1d9   :  { %3053 = vmatmul.mubr.msk.f32.vlgmr.msra.gmra.mrb[110].mxu1 %vm79_vm0, %v3715_v31 }
 0x1da   :  { %2242 = vmatprep.mubr.f32.mxu1 %v3636_v0 }
 0x1db   :  { %2995 = vmatmul.mubr.msk.f32.gmra.mrb[112].mxu0 %vm79_vm0, %v3915_v2 }
 0x1dc   :  { %1677 = vmatprep.mubr.f32.mxu0 %v3636_v0 }
 0x1dd   :  { %3054 = vmatmul.mubr.msk.f32.gmra.mrb[112].mxu1 %vm79_vm0, %v3737_v39 }
 0x1de   :  { %2248 = vmatprep.mubr.f32.mxu1 %v3636_v0 }
 0x1df   :  { %2996 = vmatmul.mubr.msk.f32.gmra.mrb[114].mxu0 %vm79_vm0, %v3927_v3 }
 0x1e0   :  { %v899_v20 = vpop.f32.mrb[8].mxu1  ;;  %1683 = vmatprep.mubr.f32.mxu0 %v3636_v0 }
 0x1e1   :  { %1376 = vst [vmem:[#allocation8 + $0xd8] sm:$0xff] %v899_v20  ;;  %v901_v21 = vpop.f32.mrb[9].mxu1  ;;  %3055 = vmatmul.mubr.msk.f32.gmra.mrb[114].mxu1 %vm79_vm0, %v3759_v47  ;;  %v845_v22 = vpop.f32.mrb[10].mxu0 }
 0x1e2   :  { %1377 = vst [vmem:[#allocation8 + $0xe0] sm:$0xff] %v901_v21  ;;  %2254 = vmatprep.mubr.f32.mxu1 %v3636_v0  ;;  %1349 = vst [vmem:[#allocation8] sm:$0xff] %v845_v22  ;;  %v847_v23 = vpop.f32.mrb[11].mxu0 }
 0x1e3   :  { %1350 = vst [vmem:[#allocation8 + $0x8] sm:$0xff] %v847_v23  ;;  %2997 = vmatmul.mubr.msk.f32.gmra.mrb[116].mxu0 %vm79_vm0, %v3939_v4 }
 0x1e4   :  { %v905_v24 = vpop.f32.mrb[10].mxu1  ;;  %1689 = vmatprep.mubr.f32.mxu0 %v3636_v0 }
 0x1e5   :  { %1379 = vst [vmem:[#allocation8 + $0xf0] sm:$0xff] %v905_v24  ;;  %v907_v25 = vpop.f32.mrb[11].mxu1  ;;  %3056 = vmatmul.mubr.msk.f32.gmra.mrb[116].mxu1 %vm79_vm0, %v3775_v50  ;;  %v851_v26 = vpop.f32.mrb[12].mxu0 }
 0x1e6   :  { %1380 = vst [vmem:[#allocation8 + $0xf8] sm:$0xff] %v907_v25  ;;  %2260 = vmatprep.mubr.f32.mxu1 %v3636_v0  ;;  %1352 = vst [vmem:[#allocation8 + $0x18] sm:$0xff] %v851_v26  ;;  %v853_v27 = vpop.f32.mrb[13].mxu0 }
 0x1e7   :  { %1353 = vst [vmem:[#allocation8 + $0x20] sm:$0xff] %v853_v27  ;;  %2998 = vmatmul.mubr.msk.f32.gmra.mrb[118].mxu0 %vm79_vm0, %v3951_v5 }
 0x1e8   :  { %v911_v28 = vpop.f32.mrb[12].mxu1  ;;  %1695 = vmatprep.mubr.f32.mxu0 %v3636_v0 }
 0x1e9   :  { %1382 = vst [vmem:[#allocation8 + $0x108] sm:$0xff] %v911_v28  ;;  %v913_v30 = vpop.f32.mrb[13].mxu1  ;;  %3057 = vmatmul.mubr.msk.f32.gmra.mrb[118].mxu1 %vm79_vm0, %v3791_v52  ;;  %v857_v32 = vpop.f32.mrb[14].mxu0 }
 0x1ea   :  { %1383 = vst [vmem:[#allocation8 + $0x110] sm:$0xff] %v913_v30  ;;  %2266 = vmatprep.mubr.f32.mxu1 %v3636_v0  ;;  %1355 = vst [vmem:[#allocation8 + $0x30] sm:$0xff] %v857_v32  ;;  %v859_v33 = vpop.f32.mrb[15].mxu0 }
 0x1eb   :  { %1356 = vst [vmem:[#allocation8 + $0x38] sm:$0xff] %v859_v33  ;;  %2999 = vmatmul.mubr.msk.f32.gmra.mrb[120].mxu0 %vm79_vm0, %v3963_v6 }
 0x1ec   :  { %v917_v34 = vpop.f32.mrb[14].mxu1  ;;  %1701 = vmatprep.mubr.f32.mxu0 %v3636_v0 }
 0x1ed   :  { %1385 = vst [vmem:[#allocation8 + $0x120] sm:$0xff] %v917_v34  ;;  %v919_v35 = vpop.f32.mrb[15].mxu1  ;;  %3058 = vmatmul.mubr.msk.f32.gmra.mrb[120].mxu1 %vm79_vm0, %v3807_v54  ;;  %v863_v36 = vpop.f32.mrb[16].mxu0 }
 0x1ee   :  { %1386 = vst [vmem:[#allocation8 + $0x128] sm:$0xff] %v919_v35  ;;  %2272 = vmatprep.mubr.f32.mxu1 %v3636_v0  ;;  %1358 = vst [vmem:[#allocation8 + $0x48] sm:$0xff] %v863_v36  ;;  %v865_v38 = vpop.f32.mrb[17].mxu0 }
 0x1ef   :  { %1359 = vst [vmem:[#allocation8 + $0x50] sm:$0xff] %v865_v38  ;;  %3000 = vmatmul.mubr.msk.f32.gmra.mrb[122].mxu0 %vm79_vm0, %v3975_v7 }
 0x1f0   :  { %v923_v40 = vpop.f32.mrb[16].mxu1  ;;  %1707 = vmatprep.mubr.f32.mxu0 %v3636_v0 }
 0x1f1   :  { %1388 = vst [vmem:[#allocation8 + $0x138] sm:$0xff] %v923_v40  ;;  %v925_v41 = vpop.f32.mrb[17].mxu1  ;;  %3059 = vmatmul.mubr.msk.f32.gmra.mrb[122].mxu1 %vm79_vm0, %v3823_v56  ;;  %v869_v42 = vpop.f32.mrb[18].mxu0 }
 0x1f2   :  { %1389 = vst [vmem:[#allocation8 + $0x140] sm:$0xff] %v925_v41  ;;  %2278 = vmatprep.mubr.f32.mxu1 %v3636_v0  ;;  %1361 = vst [vmem:[#allocation8 + $0x60] sm:$0xff] %v869_v42  ;;  %v871_v43 = vpop.f32.mrb[19].mxu0 }
 0x1f3   :  { %1362 = vst [vmem:[#allocation8 + $0x68] sm:$0xff] %v871_v43  ;;  %3001 = vmatmul.mubr.msk.f32.gmra.mrb[124].mxu0 %vm79_vm0, %v3987_v8 }
 0x1f4   :  { %v929_v45 = vpop.f32.mrb[18].mxu1  ;;  %1713 = vmatprep.mubr.f32.mxu0 %v3636_v0 }
 0x1f5   :  { %1391 = vst [vmem:[#allocation8 + $0x150] sm:$0xff] %v929_v45  ;;  %v931_v46 = vpop.f32.mrb[19].mxu1  ;;  %3060 = vmatmul.mubr.msk.f32.gmra.mrb[124].mxu1 %vm79_vm0, %v3839_v58  ;;  %v875_v48 = vpop.f32.mrb[20].mxu0 }
 0x1f6   :  { %1392 = vst [vmem:[#allocation8 + $0x158] sm:$0xff] %v931_v46  ;;  %2284 = vmatprep.mubr.f32.mxu1 %v3636_v0  ;;  %1364 = vst [vmem:[#allocation8 + $0x78] sm:$0xff] %v875_v48  ;;  %v877_v20 = vpop.f32.mrb[21].mxu0 }
 0x1f7   :  { %1365 = vst [vmem:[#allocation8 + $0x80] sm:$0xff] %v877_v20  ;;  %3002 = vmatmul.mubr.msk.f32.gmra.mrb[126].mxu0 %vm79_vm0, %v3999_v9 }
 0x1f8   :  { %v935_v21 = vpop.f32.mrb[20].mxu1  ;;  %1719 = vmatprep.mubr.f32.mxu0 %v3636_v0 }
 0x1f9   :  { %1394 = vst [vmem:[#allocation8 + $0x168] sm:$0xff] %v935_v21  ;;  %v937_v22 = vpop.f32.mrb[21].mxu1  ;;  %3061 = vmatmul.mubr.msk.f32.gmra.mrb[126].mxu1 %vm79_vm0, %v3855_v60  ;;  %v881_v23 = vpop.f32.mrb[22].mxu0 }
 0x1fa   :  { %1395 = vst [vmem:[#allocation8 + $0x170] sm:$0xff] %v937_v22  ;;  %2290 = vmatprep.mubr.f32.mxu1 %v3636_v0  ;;  %1367 = vst [vmem:[#allocation8 + $0x90] sm:$0xff] %v881_v23  ;;  %v883_v24 = vpop.f32.mrb[23].mxu0 }
 0x1fb   :  { %1368 = vst [vmem:[#allocation8 + $0x98] sm:$0xff] %v883_v24  ;;  %3003 = vmatmul.mubr.msk.f32.gmra.mrb[128].mxu0 %vm79_vm0, %v4011_v10 }
 0x1fc   :  { %v941_v25 = vpop.f32.mrb[22].mxu1  ;;  %1725 = vmatprep.mubr.f32.mxu0 %v3636_v0 }
 0x1fd   :  { %1397 = vst [vmem:[#allocation8 + $0x180] sm:$0xff] %v941_v25  ;;  %v943_v26 = vpop.f32.mrb[23].mxu1  ;;  %3062 = vmatmul.mubr.msk.f32.gmra.mrb[128].mxu1 %vm79_vm0, %v3710_v29  ;;  %v887_v27 = vpop.f32.mrb[24].mxu0 }
 0x1fe   :  { %1398 = vst [vmem:[#allocation8 + $0x188] sm:$0xff] %v943_v26  ;;  %2296 = vmatprep.mubr.f32.mxu1 %v3636_v0  ;;  %1370 = vst [vmem:[#allocation8 + $0xa8] sm:$0xff] %v887_v27  ;;  %v889_v28 = vpop.f32.mrb[25].mxu0 }
 0x1ff   :  { %1371 = vst [vmem:[#allocation8 + $0xb0] sm:$0xff] %v889_v28  ;;  %3004 = vmatmul.mubr.msk.f32.gmra.mrb[130].mxu0 %vm79_vm0, %v4023_v11 }
 0x200   :  { %v947_v30 = vpop.f32.mrb[24].mxu1  ;;  %1731 = vmatprep.mubr.f32.mxu0 %v3636_v0 }
 0x201   :  { %1400 = vst [vmem:[#allocation8 + $0x198] sm:$0xff] %v947_v30  ;;  %v949_v32 = vpop.f32.mrb[25].mxu1  ;;  %3063 = vmatmul.mubr.msk.f32.gmra.mrb[130].mxu1 %vm79_vm0, %v3730_v37  ;;  %v893_v33 = vpop.f32.mrb[26].mxu0 }
 0x202   :  { %1401 = vst [vmem:[#allocation8 + $0x1a0] sm:$0xff] %v949_v32  ;;  %2302 = vmatprep.mubr.f32.mxu1 %v3636_v0  ;;  %1373 = vst [vmem:[#allocation8 + $0xc0] sm:$0xff] %v893_v33  ;;  %v895_v29 = vpop.f32.mrb[27].mxu0 }
 0x203   :  { %1374 = vst [vmem:[#allocation8 + $0xc8] sm:$0xff] %v895_v29  ;;  %3005 = vmatmul.mubr.msk.f32.gmra.mrb[132].mxu0 %vm79_vm0, %v4035_v12 }
 0x204   :  { %v953_v34 = vpop.f32.mrb[26].mxu1  ;;  %1737 = vmatprep.mubr.f32.mxu0 %v3636_v0 }
 0x205   :  { %1403 = vst [vmem:[#allocation8 + $0x1b0] sm:$0xff] %v953_v34  ;;  %v955_v35 = vpop.f32.mrb[27].mxu1  ;;  %3064 = vmatmul.mubr.msk.f32.gmra.mrb[132].mxu1 %vm79_vm0, %v3751_v44  ;;  %v3298_v36 = vpop.f32.mrb[28].mxu0 }
 0x206   :  { %1404 = vst [vmem:[#allocation8 + $0x1b8] sm:$0xff] %v955_v35  ;;  %2308 = vmatprep.mubr.f32.mxu1 %v3636_v0  ;;  %1354 = vst [vmem:[#allocation8 + $0x28] sm:$0xff] %v3298_v36  ;;  %v1150_v37 = vpop.f32.mrb[29].mxu0 }
 0x207   :  { %1351 = vst [vmem:[#allocation8 + $0x10] sm:$0xff] %v1150_v37  ;;  %3006 = vmatmul.mubr.msk.f32.gmra.mrb[134].mxu0 %vm79_vm0, %v4047_v13 }
 0x208   :  { %v959_v38 = vpop.f32.mrb[28].mxu1  ;;  %1743 = vmatprep.mubr.f32.mxu0 %v3636_v0 }
 0x209   :  { %1406 = vst [vmem:[#allocation8 + $0x1c8] sm:$0xff] %v959_v38  ;;  %v961_v40 = vpop.f32.mrb[29].mxu1  ;;  %3065 = vmatmul.mubr.msk.f32.gmra.mrb[134].mxu1 %vm79_vm0, %v3769_v49  ;;  %v3301_v41 = vpop.f32.mrb[30].mxu0 }
 0x20a   :  { %1407 = vst [vmem:[#allocation8 + $0x1d0] sm:$0xff] %v961_v40  ;;  %2314 = vmatprep.mubr.f32.mxu1 %v3636_v0  ;;  %1360 = vst [vmem:[#allocation8 + $0x58] sm:$0xff] %v3301_v41  ;;  %v1160_v42 = vpop.f32.mrb[31].mxu0 }
 0x20b   :  { %1357 = vst [vmem:[#allocation8 + $0x40] sm:$0xff] %v1160_v42  ;;  %3007 = vmatmul.mubr.msk.f32.gmra.mrb[136].mxu0 %vm79_vm0, %v4059_v14 }
 0x20c   :  { %v965_v43 = vpop.f32.mrb[30].mxu1  ;;  %1749 = vmatprep.mubr.f32.mxu0 %v3636_v0 }
 0x20d   :  { %1409 = vst [vmem:[#allocation8 + $0x1e0] sm:$0xff] %v965_v43  ;;  %v967_v45 = vpop.f32.mrb[31].mxu1  ;;  %3066 = vmatmul.mubr.msk.f32.gmra.mrb[136].mxu1 %vm79_vm0, %v3785_v51  ;;  %v3304_v46 = vpop.f32.mrb[32].mxu0 }
 0x20e   :  { %1410 = vst [vmem:[#allocation8 + $0x1e8] sm:$0xff] %v967_v45  ;;  %2320 = vmatprep.mubr.f32.mxu1 %v3636_v0  ;;  %1366 = vst [vmem:[#allocation8 + $0x88] sm:$0xff] %v3304_v46  ;;  %v1170_v48 = vpop.f32.mrb[33].mxu0 }
 0x20f   :  { %1363 = vst [vmem:[#allocation8 + $0x70] sm:$0xff] %v1170_v48  ;;  %3008 = vmatmul.mubr.msk.f32.gmra.mrb[138].mxu0 %vm79_vm0, %v4071_v15 }
 0x210   :  { %v971_v20 = vpop.f32.mrb[32].mxu1  ;;  %1755 = vmatprep.mubr.f32.mxu0 %v3636_v0 }
 0x211   :  { %1412 = vst [vmem:[#allocation8 + $0x1f8] sm:$0xff] %v971_v20  ;;  %v973_v21 = vpop.f32.mrb[33].mxu1  ;;  %3067 = vmatmul.mubr.msk.f32.gmra.mrb[138].mxu1 %vm79_vm0, %v3801_v53  ;;  %v3307_v22 = vpop.f32.mrb[34].mxu0 }
 0x212   :  { %1413 = vst [vmem:[#allocation8 + $0x200] sm:$0xff] %v973_v21  ;;  %2326 = vmatprep.mubr.f32.mxu1 %v3636_v0  ;;  %1372 = vst [vmem:[#allocation8 + $0xb8] sm:$0xff] %v3307_v22  ;;  %v1180_v23 = vpop.f32.mrb[35].mxu0 }
 0x213   :  { %1369 = vst [vmem:[#allocation8 + $0xa0] sm:$0xff] %v1180_v23  ;;  %3009 = vmatmul.mubr.msk.f32.gmra.mrb[140].mxu0 %vm79_vm0, %v4083_v16 }
 0x214   :  { %v977_v24 = vpop.f32.mrb[34].mxu1  ;;  %1761 = vmatprep.mubr.f32.mxu0 %v3636_v0 }
 0x215   :  { %1415 = vst [vmem:[#allocation8 + $0x210] sm:$0xff] %v977_v24  ;;  %v979_v15 = vpop.f32.mrb[35].mxu1  ;;  %3068 = vmatmul.mubr.msk.f32.gmra.mrb[140].mxu1 %vm79_vm0, %v3817_v55  ;;  %v3310_v25 = vpop.f32.mrb[36].mxu0 }
 0x216   :  { %1416 = vst [vmem:[#allocation8 + $0x218] sm:$0xff] %v979_v15  ;;  %2332 = vmatprep.mubr.f32.mxu1 %v3636_v0  ;;  %1378 = vst [vmem:[#allocation8 + $0xe8] sm:$0xff] %v3310_v25  ;;  %v1190_v26 = vpop.f32.mrb[37].mxu0 }
 0x217   :  { %1375 = vst [vmem:[#allocation8 + $0xd0] sm:$0xff] %v1190_v26  ;;  %3010 = vmatmul.mubr.msk.f32.gmra.mrb[142].mxu0 %vm79_vm0, %v4094_v17 }
 0x218   :  { %v983_v27 = vpop.f32.mrb[36].mxu1  ;;  %1767 = vmatprep.mubr.f32.mxu0 %v3636_v0 }
 0x219   :  { %1418 = vst [vmem:[#allocation8 + $0x228] sm:$0xff] %v983_v27  ;;  %v985_v16 = vpop.f32.mrb[37].mxu1  ;;  %3069 = vmatmul.mubr.msk.f32.gmra.mrb[142].mxu1 %vm79_vm0, %v3833_v57  ;;  %v3313_v28 = vpop.f32.mrb[38].mxu0 }
 0x21a   :  { %1419 = vst [vmem:[#allocation8 + $0x230] sm:$0xff] %v985_v16  ;;  %2338 = vmatprep.mubr.f32.mxu1 %v3636_v0  ;;  %1384 = vst [vmem:[#allocation8 + $0x118] sm:$0xff] %v3313_v28  ;;  %v1200_v30 = vpop.f32.mrb[39].mxu0 }
 0x21b   :  { %1381 = vst [vmem:[#allocation8 + $0x100] sm:$0xff] %v1200_v30  ;;  %3011 = vmatmul.mubr.msk.f32.gmra.mrb[144].mxu0 %vm79_vm0, %v4102_v18 }
 0x21c   :  { %v989_v32 = vpop.f32.mrb[38].mxu1  ;;  %1773 = vmatprep.mubr.f32.mxu0 %v3636_v0 }
 0x21d   :  { %1421 = vst [vmem:[#allocation8 + $0x240] sm:$0xff] %v989_v32  ;;  %v991_v17 = vpop.f32.mrb[39].mxu1  ;;  %3070 = vmatmul.mubr.msk.f32.gmra.mrb[144].mxu1 %vm79_vm0, %v3849_v59  ;;  %v3316_v33 = vpop.f32.mrb[40].mxu0 }
 0x21e   :  { %1422 = vst [vmem:[#allocation8 + $0x248] sm:$0xff] %v991_v17  ;;  %2344 = vmatprep.mubr.f32.mxu1 %v3636_v0  ;;  %1390 = vst [vmem:[#allocation8 + $0x148] sm:$0xff] %v3316_v33  ;;  %v1210_v29 = vpop.f32.mrb[41].mxu0 }
 0x21f   :  { %1387 = vst [vmem:[#allocation8 + $0x130] sm:$0xff] %v1210_v29  ;;  %3012 = vmatmul.mubr.msk.f32.gmra.mrb[146].mxu0 %vm79_vm0, %v4109_v19 }
 0x220   :  { %v995_v34 = vpop.f32.mrb[40].mxu1  ;;  %3424 = vmatprep.mubr.msk.f32.mxu0 %vm79_vm0, %v3715_v31 }
 0x221   :  { %1424 = vst [vmem:[#allocation8 + $0x258] sm:$0xff] %v995_v34  ;;  %v997_v18 = vpop.f32.mrb[41].mxu1  ;;  %3071 = vmatmul.mubr.msk.f32.gmra.mrb[146].mxu1 %vm79_vm0, %v3865_v61  ;;  %v3319_v35 = vpop.f32.mrb[42].mxu0 }
 0x222   :  { %1425 = vst [vmem:[#allocation8 + $0x260] sm:$0xff] %v997_v18  ;;  %2350 = vmatprep.mubr.f32.mxu1 %v3636_v0  ;;  %1396 = vst [vmem:[#allocation8 + $0x178] sm:$0xff] %v3319_v35  ;;  %v1220_v36 = vpop.f32.mrb[43].mxu0  ;;  %v3545_v18 = vld [vmem:[%s4569_s2 + $0xd8] sm:$0xff] }
 0x223   :  { %1393 = vst [vmem:[#allocation8 + $0x160] sm:$0xff] %v1220_v36  ;;  %3425 = vmatmul.mubr.msk.f32.vlgmr.msra.gmra.mrb[148].mxu0 %vm79_vm0, %v3737_v39 }
 0x224   :  { %v1001_v19 = vpop.f32.mrb[42].mxu1  ;;  %3427 = vmatprep.mubr.msk.f32.mxu0 %vm79_vm0, %v3759_v47 }
 0x225   :  { %1427 = vst [vmem:[#allocation8 + $0x270] sm:$0xff] %v1001_v19  ;;  %v1003_v31 = vpop.f32.mrb[43].mxu1  ;;  %3072 = vmatmul.mubr.msk.f32.gmra.mrb[148].mxu1 %vm79_vm0, %v3877_v62  ;;  %v3322_v37 = vpop.f32.mrb[44].mxu0 }
 0x226   :  { %1428 = vst [vmem:[#allocation8 + $0x278] sm:$0xff] %v1003_v31  ;;  %2356 = vmatprep.mubr.f32.mxu1 %v3636_v0  ;;  %1402 = vst [vmem:[#allocation8 + $0x1a8] sm:$0xff] %v3322_v37  ;;  %v1230_v38 = vpop.f32.mrb[45].mxu0  ;;  %v3547_v31 = vld [vmem:[%s4569_s2 + $0xe8] sm:$0xff] }
 0x227   :  { %1399 = vst [vmem:[#allocation8 + $0x190] sm:$0xff] %v1230_v38  ;;  %3428 = vmatmul.mubr.msk.f32.gmra.mrb[150].mxu0 %vm79_vm0, %v3775_v50  ;;  %v3548_v38 = vld [vmem:[%s4569_s2 + $0xf0] sm:$0xff] }
 0x228   :  { %v1007_v39 = vpop.f32.mrb[44].mxu1  ;;  %3430 = vmatprep.mubr.msk.f32.mxu0 %vm79_vm0, %v3791_v52 }
 0x229   :  { %1430 = vst [vmem:[#allocation8 + $0x288] sm:$0xff] %v1007_v39  ;;  %v1009_v47 = vpop.f32.mrb[45].mxu1  ;;  %3073 = vmatmul.mubr.msk.f32.gmra.mrb[150].mxu1 %vm79_vm0, %v3891_v63  ;;  %v3325_v40 = vpop.f32.mrb[46].mxu0 }
 0x22a   :  { %1431 = vst [vmem:[#allocation8 + $0x290] sm:$0xff] %v1009_v47  ;;  %2362 = vmatprep.mubr.f32.mxu1 %v3636_v0  ;;  %1408 = vst [vmem:[#allocation8 + $0x1d8] sm:$0xff] %v3325_v40  ;;  %v1240_v41 = vpop.f32.mrb[47].mxu0  ;;  %v3549_v40 = vld [vmem:[%s4569_s2 + $0xf8] sm:$0xff] }
 0x22b   :  { %1405 = vst [vmem:[#allocation8 + $0x1c0] sm:$0xff] %v1240_v41  ;;  %3431 = vmatmul.mubr.msk.f32.gmra.mrb[152].mxu0 %vm79_vm0, %v3807_v54 }
 0x22c   :  { %v1013_v50 = vpop.f32.mrb[46].mxu1  ;;  %3433 = vmatprep.mubr.msk.f32.mxu0 %vm79_vm0, %v3823_v56 }
 0x22d   :  { %1433 = vst [vmem:[#allocation8 + $0x2a0] sm:$0xff] %v1013_v50  ;;  %v1015_v52 = vpop.f32.mrb[47].mxu1  ;;  %3074 = vmatmul.mubr.msk.f32.gmra.mrb[152].mxu1 %vm79_vm0, %v3903_v1  ;;  %v3328_v42 = vpop.f32.mrb[48].mxu0  ;;  %v3550_v50 = vld [vmem:[%s4569_s2 + $0x100] sm:$0xff] }
 0x22e   :  { %1434 = vst [vmem:[#allocation8 + $0x2a8] sm:$0xff] %v1015_v52  ;;  %2368 = vmatprep.mubr.f32.mxu1 %v3636_v0  ;;  %1414 = vst [vmem:[#allocation8 + $0x208] sm:$0xff] %v3328_v42  ;;  %v1250_v43 = vpop.f32.mrb[49].mxu0 }
 0x22f   :  { %1411 = vst [vmem:[#allocation8 + $0x1f0] sm:$0xff] %v1250_v43  ;;  %3434 = vmatmul.mubr.msk.f32.gmra.mrb[154].mxu0 %vm79_vm0, %v3839_v58  ;;  %v3542_v58 = vld [vmem:[%s4569_s2 + $0x48] sm:$0xff] }
 0x230   :  { %v1019_v54 = vpop.f32.mrb[48].mxu1  ;;  %3436 = vmatprep.mubr.msk.f32.mxu0 %vm79_vm0, %v3855_v60  ;;  %v3543_v60 = vld [vmem:[%s4569_s2 + $0x50] sm:$0xff]  ;;  %v3551_v43 = vld [vmem:[%s4569_s2 + $0x108] sm:$0xff] }
 0x231   :  { %1436 = vst [vmem:[#allocation8 + $0x2b8] sm:$0xff] %v1019_v54  ;;  %v1021_v56 = vpop.f32.mrb[49].mxu1  ;;  %3075 = vmatmul.mubr.msk.f32.gmra.mrb[154].mxu1 %vm79_vm0, %v3915_v2  ;;  %v3331_v45 = vpop.f32.mrb[50].mxu0 }
 0x232   :  { %1437 = vst [vmem:[#allocation8 + $0x2c0] sm:$0xff] %v1021_v56  ;;  %2374 = vmatprep.mubr.f32.mxu1 %v3636_v0  ;;  %1420 = vst [vmem:[#allocation8 + $0x238] sm:$0xff] %v3331_v45  ;;  %v1260_v46 = vpop.f32.mrb[51].mxu0  ;;  %v3552_v56 = vld [vmem:[%s4569_s2 + $0x110] sm:$0xff]  ;;  %v3553_v45 = vld [vmem:[%s4569_s2 + $0x118] sm:$0xff] }
 0x233   :  { %1417 = vst [vmem:[#allocation8 + $0x220] sm:$0xff] %v1260_v46  ;;  %3437 = vmatmul.mubr.msk.f32.gmra.mrb[156].mxu0 %vm79_vm0, %v3542_v58 }
 0x234   :  { %v1025_v48 = vpop.f32.mrb[50].mxu1  ;;  %3439 = vmatprep.mubr.msk.f32.mxu0 %vm79_vm0, %v3543_v60  ;;  %v3554_v60 = vld [vmem:[%s4569_s2 + $0x120] sm:$0xff] }
 0x235   :  { %1439 = vst [vmem:[#allocation8 + $0x2d0] sm:$0xff] %v1025_v48  ;;  %v1027_v20 = vpop.f32.mrb[51].mxu1  ;;  %3076 = vmatmul.mubr.msk.f32.gmra.mrb[156].mxu1 %vm79_vm0, %v3927_v3  ;;  %v3334_v21 = vpop.f32.mrb[52].mxu0 }
 0x236   :  { %1440 = vst [vmem:[#allocation8 + $0x2d8] sm:$0xff] %v1027_v20  ;;  %2380 = vmatprep.mubr.f32.mxu1 %v3636_v0  ;;  %1426 = vst [vmem:[#allocation8 + $0x268] sm:$0xff] %v3334_v21  ;;  %v1270_v22 = vpop.f32.mrb[53].mxu0 }
 0x237   :  { %1423 = vst [vmem:[#allocation8 + $0x250] sm:$0xff] %v1270_v22  ;;  %3440 = vmatmul.mubr.msk.f32.gmra.mrb[158].mxu0 %vm79_vm0, %v3751_v44 }
 0x238   :  { %v1031_v23 = vpop.f32.mrb[52].mxu1  ;;  %3442 = vmatprep.mubr.msk.f32.mxu0 %vm79_vm0, %v3769_v49 }
 0x239   :  { %1442 = vst [vmem:[#allocation8 + $0x2e8] sm:$0xff] %v1031_v23  ;;  %v1033_v24 = vpop.f32.mrb[53].mxu1  ;;  %3077 = vmatmul.mubr.msk.f32.gmra.mrb[158].mxu1 %vm79_vm0, %v3939_v4  ;;  %v3337_v15 = vpop.f32.mrb[54].mxu0  ;;  %v3555_v23 = vld [vmem:[%s4569_s2 + $0x128] sm:$0xff] }
 0x23a   :  { %1443 = vst [vmem:[#allocation8 + $0x2f0] sm:$0xff] %v1033_v24  ;;  %2386 = vmatprep.mubr.f32.mxu1 %v3636_v0  ;;  %1432 = vst [vmem:[#allocation8 + $0x298] sm:$0xff] %v3337_v15  ;;  %v1280_v25 = vpop.f32.mrb[55].mxu0  ;;  %v3556_v15 = vld [vmem:[%s4569_s2 + $0x130] sm:$0xff] }
 0x23b   :  { %1429 = vst [vmem:[#allocation8 + $0x280] sm:$0xff] %v1280_v25  ;;  %3443 = vmatmul.mubr.msk.f32.gmra.mrb[160].mxu0 %vm79_vm0, %v3785_v51 }
 0x23c   :  { %v1037_v44 = vpop.f32.mrb[54].mxu1  ;;  %3445 = vmatprep.mubr.msk.f32.mxu0 %vm79_vm0, %v3801_v53 }
 0x23d   :  { %1445 = vst [vmem:[#allocation8 + $0x300] sm:$0xff] %v1037_v44  ;;  %v1039_v49 = vpop.f32.mrb[55].mxu1  ;;  %3078 = vmatmul.mubr.msk.f32.gmra.mrb[160].mxu1 %vm79_vm0, %v3951_v5  ;;  %v3340_v26 = vpop.f32.mrb[56].mxu0 }
 0x23e   :  { %1446 = vst [vmem:[#allocation8 + $0x308] sm:$0xff] %v1039_v49  ;;  %2392 = vmatprep.mubr.f32.mxu1 %v3636_v0  ;;  %1438 = vst [vmem:[#allocation8 + $0x2c8] sm:$0xff] %v3340_v26  ;;  %v1290_v27 = vpop.f32.mrb[57].mxu0  ;;  %v3557_v26 = vld [vmem:[%s4569_s2 + $0x138] sm:$0xff] }
 0x23f   :  { %1435 = vst [vmem:[#allocation8 + $0x2b0] sm:$0xff] %v1290_v27  ;;  %3446 = vmatmul.mubr.msk.f32.gmra.mrb[162].mxu0 %vm79_vm0, %v3817_v55 }
 0x240   :  { %v1043_v51 = vpop.f32.mrb[56].mxu1  ;;  %3448 = vmatprep.mubr.msk.f32.mxu0 %vm79_vm0, %v3833_v57 }
 0x241   :  { %1448 = vst [vmem:[#allocation8 + $0x318] sm:$0xff] %v1043_v51  ;;  %v1045_v53 = vpop.f32.mrb[57].mxu1  ;;  %3079 = vmatmul.mubr.msk.f32.gmra.mrb[162].mxu1 %vm79_vm0, %v3963_v6  ;;  %v3343_v5 = vpop.f32.mrb[58].mxu0 }
 0x242   :  { %1449 = vst [vmem:[#allocation8 + $0x320] sm:$0xff] %v1045_v53  ;;  %2398 = vmatprep.mubr.f32.mxu1 %v3636_v0  ;;  %1444 = vst [vmem:[#allocation8 + $0x2f8] sm:$0xff] %v3343_v5  ;;  %v1300_v16 = vpop.f32.mrb[59].mxu0 }
 0x243   :  { %1441 = vst [vmem:[#allocation8 + $0x2e0] sm:$0xff] %v1300_v16  ;;  %3449 = vmatmul.mubr.msk.f32.gmra.mrb[164].mxu0 %vm79_vm0, %v3849_v59 }
 0x244   :  { %v1049_v55 = vpop.f32.mrb[58].mxu1  ;;  %3451 = vmatprep.mubr.msk.f32.mxu0 %vm79_vm0, %v3865_v61 }
 0x245   :  { %1451 = vst [vmem:[#allocation8 + $0x330] sm:$0xff] %v1049_v55  ;;  %v1051_v57 = vpop.f32.mrb[59].mxu1  ;;  %3080 = vmatmul.mubr.msk.f32.gmra.mrb[164].mxu1 %vm79_vm0, %v3975_v7  ;;  %v3346_v28 = vpop.f32.mrb[60].mxu0 }
 0x246   :  { %1452 = vst [vmem:[#allocation8 + $0x338] sm:$0xff] %v1051_v57  ;;  %2404 = vmatprep.mubr.f32.mxu1 %v3636_v0  ;;  %1450 = vst [vmem:[#allocation8 + $0x328] sm:$0xff] %v3346_v28  ;;  %v1310_v30 = vpop.f32.mrb[61].mxu0 }
 0x247   :  { %1447 = vst [vmem:[#allocation8 + $0x310] sm:$0xff] %v1310_v30  ;;  %3452 = vmatmul.mubr.msk.f32.gmra.mrb[166].mxu0 %vm79_vm0, %v3877_v62 }
 0x248   :  { %v1055_v59 = vpop.f32.mrb[60].mxu1  ;;  %3454 = vmatprep.mubr.msk.f32.mxu0 %vm79_vm0, %v3891_v63 }
 0x249   :  { %1454 = vst [vmem:[#allocation8 + $0x348] sm:$0xff] %v1055_v59  ;;  %v1057_v61 = vpop.f32.mrb[61].mxu1  ;;  %3081 = vmatmul.mubr.msk.f32.gmra.mrb[166].mxu1 %vm79_vm0, %v3987_v8  ;;  %v3349_v7 = vpop.f32.mrb[62].mxu0 }
 0x24a   :  { %1455 = vst [vmem:[#allocation8 + $0x350] sm:$0xff] %v1057_v61  ;;  %2410 = vmatprep.mubr.f32.mxu1 %v3636_v0  ;;  %1456 = vst [vmem:[#allocation8 + $0x358] sm:$0xff] %v3349_v7  ;;  %v1320_v32 = vpop.f32.mrb[63].mxu0 }
 0x24b   :  { %1453 = vst [vmem:[#allocation8 + $0x340] sm:$0xff] %v1320_v32  ;;  %3455 = vmatmul.mubr.msk.f32.gmra.mrb[168].mxu0 %vm79_vm0, %v3903_v1 }
 0x24c   :  { %v1061_v62 = vpop.f32.mrb[62].mxu1  ;;  %3457 = vmatprep.mubr.msk.f32.mxu0 %vm79_vm0, %v3915_v2 }
 0x24d   :  { %1457 = vst [vmem:[#allocation8 + $0x360] sm:$0xff] %v1061_v62  ;;  %v1063_v63 = vpop.f32.mrb[63].mxu1  ;;  %3082 = vmatmul.mubr.msk.f32.gmra.mrb[168].mxu1 %vm79_vm0, %v3999_v9  ;;  %v3352_v8 = vpop.f32.mrb[64].mxu0 }
 0x24e   :  { %1458 = vst [vmem:[#allocation8 + $0x368] sm:$0xff] %v1063_v63  ;;  %2416 = vmatprep.mubr.f32.mxu1 %v3636_v0  ;;  %1462 = vst [vmem:[#allocation8 + $0x388] sm:$0xff] %v3352_v8  ;;  %v1330_v17 = vpop.f32.mrb[65].mxu0 }
 0x24f   :  { %1459 = vst [vmem:[#allocation8 + $0x370] sm:$0xff] %v1330_v17  ;;  %3458 = vmatmul.mubr.msk.f32.gmra.mrb[170].mxu0 %vm79_vm0, %v3927_v3  ;;  %v3544_v3 = vld [vmem:[%s4569_s2 + $0xc8] sm:$0xff] }
 0x250   :  { %v1067_v1 = vpop.f32.mrb[64].mxu1  ;;  %3460 = vmatprep.mubr.msk.f32.mxu0 %vm79_vm0, %v3939_v4 }
 0x251   :  { %1460 = vst [vmem:[#allocation8 + $0x378] sm:$0xff] %v1067_v1  ;;  %v1069_v2 = vpop.f32.mrb[65].mxu1  ;;  %3083 = vmatmul.mubr.msk.f32.gmra.mrb[170].mxu1 %vm79_vm0, %v4011_v10  ;;  %v3355_v9 = vpop.f32.mrb[66].mxu0 }
 0x252   :  { %1461 = vst [vmem:[#allocation8 + $0x380] sm:$0xff] %v1069_v2  ;;  %2422 = vmatprep.mubr.f32.mxu1 %v3636_v0  ;;  %1468 = vst [vmem:[#allocation8 + $0x3b8] sm:$0xff] %v3355_v9  ;;  %v1340_v33 = vpop.f32.mrb[67].mxu0 }
 0x253   :  { %1465 = vst [vmem:[#allocation8 + $0x3a0] sm:$0xff] %v1340_v33  ;;  %3461 = vmatmul.mubr.msk.f32.gmra.mrb[172].mxu0 %vm79_vm0, %v3544_v3 }
 0x254   :  { %v1073_v29 = vpop.f32.mrb[66].mxu1  ;;  %3463 = vmatprep.mubr.msk.f32.mxu0 %vm79_vm0, %v3963_v6  ;;  %v3546_v6 = vld [vmem:[%s4569_s2 + $0xe0] sm:$0xff]  ;;  %s3637_s2 = smov [#allocation8]  }
 0x255   :  { %1463 = vst [vmem:[#allocation8 + $0x390] sm:$0xff] %v1073_v29  ;;  %v1075_v4 = vpop.f32.mrb[67].mxu1  ;;  %3084 = vmatmul.mubr.msk.f32.gmra.mrb[172].mxu1 %vm79_vm0, %v4023_v11  ;;  %v1541_v10 = vpop.f32.mrb[68].mxu0  ;;  %s2868_s15 = sshll.u32 %s3637_s2, 4  ;;  %s2869_s15 = int_to_ptr.vmem [resolvable:$true] %s2868_s15 }
 0x256   :  { %1464 = vst [vmem:[#allocation8 + $0x398] sm:$0xff] %v1075_v4  ;;  %2428 = vmatprep.mubr.f32.mxu1 %v3636_v0  ;;  %2046 = vst [vmem:[#allocation8 + $0x3c0] sm:$0xff] %v1541_v10  ;;  %v1543_v34 = vpop.f32.mrb[69].mxu0  ;;  %s3602_s16 = scalar_lea.vmem %s2869_s15, 46080  ;;  %p3607_p3 = scmp.lt.s32.totalorder %s2869_s15, %s2869_s15 }
 0x257   :  { %2047 = vst [vmem:[#allocation8 + $0x3c8] sm:$0xff] %v1543_v34  ;;  %3464 = vmatmul.mubr.msk.f32.gmra.mrb[174].mxu0 %vm79_vm0, %v3545_v18  ;;  %p3603_p2 = scmp.ne.s32.totalorder %s2869_s15, %s3602_s16  ;;  %p3608_p4 = scmp.lt.s32.totalorder %s3602_s16, %s3602_s16 }
 0x258   :  { %v1079_v35 = vpop.f32.mrb[68].mxu1  ;;  %3466 = vmatprep.mubr.msk.f32.mxu0 %vm79_vm0, %v3546_v6 }
 0x259   :  { %1466 = vst [vmem:[#allocation8 + $0x3a8] sm:$0xff] %v1079_v35  ;;  %v1081_v11 = vpop.f32.mrb[69].mxu1  ;;  %3085 = vmatmul.mubr.msk.f32.gmra.mrb[174].mxu1 %vm79_vm0, %v4035_v12  ;;  %v1547_v36 = vpop.f32.mrb[70].mxu0  ;;  %p3609_p5 = por %p3608_p4, %p3607_p3 }
 0x25a   :  { %1467 = vst [vmem:[#allocation8 + $0x3b0] sm:$0xff] %v1081_v11  ;;  %2434 = vmatprep.mubr.f32.mxu1 %v3636_v0  ;;  %2049 = vst [vmem:[#allocation8 + $0x3d8] sm:$0xff] %v1547_v36  ;;  %v1549_v19 = vpop.f32.mrb[71].mxu0 }
 0x25b   :  { %2050 = vst [vmem:[#allocation8 + $0x3e0] sm:$0xff] %v1549_v19  ;;  %3467 = vmatmul.mubr.msk.f32.gmra.mrb[176].mxu0 %vm79_vm0, %v3547_v31  ;;  %p3610_p6 = pnand %p3609_p5, %p3603_p2 }
 0x25c   :  { %v3362_v37 = vpop.f32.mrb[70].mxu1  ;;  %3469 = vmatprep.mubr.msk.f32.mxu0 %vm79_vm0, %v3548_v38 }
 0x25d   :  { %2051 = vst [vmem:[#allocation8 + $0x3e8] sm:$0xff] %v3362_v37  ;;  %v1846_v12 = vpop.f32.mrb[71].mxu1  ;;  %3086 = vmatmul.mubr.msk.f32.gmra.mrb[176].mxu1 %vm79_vm0, %v4047_v13 }
 0x25e   :  { %2048 = vst [vmem:[#allocation8 + $0x3d0] sm:$0xff] %v1846_v12  ;;  %2440 = vmatprep.mubr.f32.mxu1 %v3636_v0  ;;  %v1553_v39 = vpop.f32.mrb[72].mxu0 }
 0x25f   :  { %2052 = vst [vmem:[#allocation8 + $0x3f0] sm:$0xff] %v1553_v39  ;;  %v1555_v47 = vpop.f32.mrb[73].mxu0  ;;  %3470 = vmatmul.mubr.msk.f32.gmra.mrb[178].mxu0 %vm79_vm0, %v3549_v40 }
 0x260   :  { %v3365_v41 = vpop.f32.mrb[72].mxu1  ;;  %2053 = vst [vmem:[#allocation8 + $0x3f8] sm:$0xff] %v1555_v47  ;;  %3472 = vmatprep.mubr.msk.f32.mxu0 %vm79_vm0, %v3550_v50 }
 0x261   :  { %2057 = vst [vmem:[#allocation8 + $0x418] sm:$0xff] %v3365_v41  ;;  %v1856_v13 = vpop.f32.mrb[73].mxu1  ;;  %3087 = vmatmul.mubr.msk.f32.gmra.mrb[178].mxu1 %vm79_vm0, %v4059_v14 }
 0x262   :  { %2054 = vst [vmem:[#allocation8 + $0x400] sm:$0xff] %v1856_v13  ;;  %2446 = vmatprep.mubr.f32.mxu1 %v3636_v0  ;;  %v1559_v52 = vpop.f32.mrb[74].mxu0 }
 0x263   :  { %2055 = vst [vmem:[#allocation8 + $0x408] sm:$0xff] %v1559_v52  ;;  %v1561_v42 = vpop.f32.mrb[75].mxu0  ;;  %3473 = vmatmul.mubr.msk.f32.gmra.mrb[180].mxu0 %vm79_vm0, %v3551_v43 }
 0x264   :  { %v3368_v54 = vpop.f32.mrb[74].mxu1  ;;  %2056 = vst [vmem:[#allocation8 + $0x410] sm:$0xff] %v1561_v42  ;;  %3475 = vmatprep.mubr.msk.f32.mxu0 %vm79_vm0, %v3552_v56 }
 0x265   :  { %2063 = vst [vmem:[#allocation8 + $0x448] sm:$0xff] %v3368_v54  ;;  %v1866_v14 = vpop.f32.mrb[75].mxu1  ;;  %3088 = vmatmul.mubr.msk.f32.gmra.mrb[180].mxu1 %vm79_vm0, %v3553_v45 }
 0x266   :  { %2060 = vst [vmem:[#allocation8 + $0x430] sm:$0xff] %v1866_v14  ;;  %2452 = vmatprep.mubr.f32.mxu1 %v3636_v0  ;;  %v1565_v46 = vpop.f32.mrb[76].mxu0 }
 0x267   :  { %2058 = vst [vmem:[#allocation8 + $0x420] sm:$0xff] %v1565_v46  ;;  %v1567_v58 = vpop.f32.mrb[77].mxu0  ;;  %3476 = vmatmul.mubr.msk.f32.gmra.mrb[182].mxu0 %vm79_vm0, %v3553_v45 }
 0x268   :  { %v3371_v48 = vpop.f32.mrb[76].mxu1  ;;  %2059 = vst [vmem:[#allocation8 + $0x428] sm:$0xff] %v1567_v58  ;;  %3478 = vmatprep.mubr.msk.f32.mxu0 %vm79_vm0, %v3554_v60 }
 0x269   :  { %2069 = vst [vmem:[#allocation8 + $0x478] sm:$0xff] %v3371_v48  ;;  %v1876_v20 = vpop.f32.mrb[77].mxu1  ;;  %3089 = vmatmul.mubr.msk.f32.gmra.mrb[182].mxu1 %vm79_vm0, %v3554_v60 }
 0x26a   :  { %2066 = vst [vmem:[#allocation8 + $0x460] sm:$0xff] %v1876_v20  ;;  %2458 = vmatprep.mubr.f32.mxu1 %v3636_v0  ;;  %v1571_v21 = vpop.f32.mrb[78].mxu0 }
 0x26b   :  { %2061 = vst [vmem:[#allocation8 + $0x438] sm:$0xff] %v1571_v21  ;;  %v1573_v22 = vpop.f32.mrb[79].mxu0  ;;  %3479 = vmatmul.mubr.msk.f32.gmra.mrb[184].mxu0 %vm79_vm0, %v3555_v23 }
 0x26c   :  { %v3374_v24 = vpop.f32.mrb[78].mxu1  ;;  %2062 = vst [vmem:[#allocation8 + $0x440] sm:$0xff] %v1573_v22  ;;  %3481 = vmatprep.mubr.msk.f32.mxu0 %vm79_vm0, %v3556_v15 }
 0x26d   :  { %2075 = vst [vmem:[#allocation8 + $0x4a8] sm:$0xff] %v3374_v24  ;;  %v1886_v25 = vpop.f32.mrb[79].mxu1  ;;  %3090 = vmatmul.mubr.msk.f32.gmra.mrb[184].mxu1 %vm79_vm0, %v3555_v23 }
 0x26e   :  { %2072 = vst [vmem:[#allocation8 + $0x490] sm:$0xff] %v1886_v25  ;;  %2464 = vmatprep.mubr.f32.mxu1 %v3636_v0  ;;  %v1577_v44 = vpop.f32.mrb[80].mxu0 }
 0x26f   :  { %2064 = vst [vmem:[#allocation8 + $0x450] sm:$0xff] %v1577_v44  ;;  %v1579_v49 = vpop.f32.mrb[81].mxu0  ;;  %3482 = vmatmul.mubr.msk.f32.gmra.mrb[186].mxu0 %vm79_vm0, %v3557_v26 }
 0x270   :  { %v3377_v27 = vpop.f32.mrb[80].mxu1  ;;  %2065 = vst [vmem:[#allocation8 + $0x458] sm:$0xff] %v1579_v49 }
 0x271   :  { %2081 = vst [vmem:[#allocation8 + $0x4d8] sm:$0xff] %v3377_v27  ;;  %v1896_v51 = vpop.f32.mrb[81].mxu1  ;;  %3091 = vmatmul.mubr.msk.f32.gmra.mrb[186].mxu1 %vm79_vm0, %v3556_v15 }
 0x272   :  { %2078 = vst [vmem:[#allocation8 + $0x4c0] sm:$0xff] %v1896_v51  ;;  %2470 = vmatprep.mubr.f32.mxu1 %v3636_v0  ;;  %v1583_v53 = vpop.f32.mrb[82].mxu0 }
 0x273   :  { %2067 = vst [vmem:[#allocation8 + $0x468] sm:$0xff] %v1583_v53  ;;  %v1585_v5 = vpop.f32.mrb[83].mxu0 }
 0x274   :  { %v3380_v16 = vpop.f32.mrb[82].mxu1  ;;  %2068 = vst [vmem:[#allocation8 + $0x470] sm:$0xff] %v1585_v5 }
 0x275   :  { %2087 = vst [vmem:[#allocation8 + $0x508] sm:$0xff] %v3380_v16  ;;  %v1906_v55 = vpop.f32.mrb[83].mxu1  ;;  %3092 = vmatmul.mubr.msk.f32.gmra.mrb[188].mxu1 %vm79_vm0, %v3557_v26 }
 0x276   :  { %2084 = vst [vmem:[#allocation8 + $0x4f0] sm:$0xff] %v1906_v55  ;;  %v1589_v57 = vpop.f32.mrb[84].mxu0 }
 0x277   :  { %2070 = vst [vmem:[#allocation8 + $0x480] sm:$0xff] %v1589_v57  ;;  %v1591_v28 = vpop.f32.mrb[85].mxu0 }
 0x278   :  { %v3383_v30 = vpop.f32.mrb[84].mxu1  ;;  %2071 = vst [vmem:[#allocation8 + $0x488] sm:$0xff] %v1591_v28 }
 0x279   :  { %2093 = vst [vmem:[#allocation8 + $0x538] sm:$0xff] %v3383_v30  ;;  %v1916_v59 = vpop.f32.mrb[85].mxu1 }
 0x27a   :  { %2090 = vst [vmem:[#allocation8 + $0x520] sm:$0xff] %v1916_v59  ;;  %v1595_v61 = vpop.f32.mrb[86].mxu0 }
 0x27b   :  { %2073 = vst [vmem:[#allocation8 + $0x498] sm:$0xff] %v1595_v61  ;;  %v1597_v0 = vpop.f32.mrb[87].mxu0 }
 0x27c   :  { %v3386_v7 = vpop.f32.mrb[86].mxu1  ;;  %2074 = vst [vmem:[#allocation8 + $0x4a0] sm:$0xff] %v1597_v0 }
 0x27d   :  { %2099 = vst [vmem:[#allocation8 + $0x568] sm:$0xff] %v3386_v7  ;;  %v1926_v32 = vpop.f32.mrb[87].mxu1 }
 0x27e   :  { %2096 = vst [vmem:[#allocation8 + $0x550] sm:$0xff] %v1926_v32  ;;  %v1601_v62 = vpop.f32.mrb[88].mxu0 }
 0x27f   :  { %2076 = vst [vmem:[#allocation8 + $0x4b0] sm:$0xff] %v1601_v62  ;;  %v1603_v63 = vpop.f32.mrb[89].mxu0 }
 0x280   :  { %v3389_v8 = vpop.f32.mrb[88].mxu1  ;;  %2077 = vst [vmem:[#allocation8 + $0x4b8] sm:$0xff] %v1603_v63 }
 0x281   :  { %2105 = vst [vmem:[#allocation8 + $0x598] sm:$0xff] %v3389_v8  ;;  %v1936_v17 = vpop.f32.mrb[89].mxu1 }
 0x282   :  { %2102 = vst [vmem:[#allocation8 + $0x580] sm:$0xff] %v1936_v17  ;;  %v1607_v1 = vpop.f32.mrb[90].mxu0 }
 0x283   :  { %2079 = vst [vmem:[#allocation8 + $0x4c8] sm:$0xff] %v1607_v1  ;;  %v1609_v2 = vpop.f32.mrb[91].mxu0 }
 0x284   :  { %v3392_v9 = vpop.f32.mrb[90].mxu1  ;;  %2080 = vst [vmem:[#allocation8 + $0x4d0] sm:$0xff] %v1609_v2 }
 0x285   :  { %2111 = vst [vmem:[#allocation8 + $0x5c8] sm:$0xff] %v3392_v9  ;;  %v1946_v33 = vpop.f32.mrb[91].mxu1 }
 0x286   :  { %2108 = vst [vmem:[#allocation8 + $0x5b0] sm:$0xff] %v1946_v33  ;;  %v1613_v3 = vpop.f32.mrb[92].mxu0 }
 0x287   :  { %2082 = vst [vmem:[#allocation8 + $0x4e0] sm:$0xff] %v1613_v3  ;;  %v1615_v29 = vpop.f32.mrb[93].mxu0 }
 0x288   :  { %v3395_v4 = vpop.f32.mrb[92].mxu1  ;;  %2083 = vst [vmem:[#allocation8 + $0x4e8] sm:$0xff] %v1615_v29 }
 0x289   :  { %2117 = vst [vmem:[#allocation8 + $0x5f8] sm:$0xff] %v3395_v4  ;;  %v1956_v10 = vpop.f32.mrb[93].mxu1 }
 0x28a   :  { %2114 = vst [vmem:[#allocation8 + $0x5e0] sm:$0xff] %v1956_v10  ;;  %v1619_v34 = vpop.f32.mrb[94].mxu0 }
 0x28b   :  { %2085 = vst [vmem:[#allocation8 + $0x4f8] sm:$0xff] %v1619_v34  ;;  %v1621_v18 = vpop.f32.mrb[95].mxu0 }
 0x28c   :  { %v3398_v35 = vpop.f32.mrb[94].mxu1  ;;  %2086 = vst [vmem:[#allocation8 + $0x500] sm:$0xff] %v1621_v18 }
 0x28d   :  { %2123 = vst [vmem:[#allocation8 + $0x628] sm:$0xff] %v3398_v35  ;;  %v1966_v6 = vpop.f32.mrb[95].mxu1 }
 0x28e   :  { %2120 = vst [vmem:[#allocation8 + $0x610] sm:$0xff] %v1966_v6  ;;  %v1625_v11 = vpop.f32.mrb[96].mxu0 }
 0x28f   :  { %2088 = vst [vmem:[#allocation8 + $0x510] sm:$0xff] %v1625_v11  ;;  %v1627_v36 = vpop.f32.mrb[97].mxu0 }
 0x290   :  { %v3401_v19 = vpop.f32.mrb[96].mxu1  ;;  %2089 = vst [vmem:[#allocation8 + $0x518] sm:$0xff] %v1627_v36 }
 0x291   :  { %2129 = vst [vmem:[#allocation8 + $0x658] sm:$0xff] %v3401_v19  ;;  %v1976_v31 = vpop.f32.mrb[97].mxu1 }
 0x292   :  { %2126 = vst [vmem:[#allocation8 + $0x640] sm:$0xff] %v1976_v31  ;;  %v1631_v37 = vpop.f32.mrb[98].mxu0 }
 0x293   :  { %2091 = vst [vmem:[#allocation8 + $0x528] sm:$0xff] %v1631_v37  ;;  %v1633_v38 = vpop.f32.mrb[99].mxu0 }
 0x294   :  { %v3404_v12 = vpop.f32.mrb[98].mxu1  ;;  %2092 = vst [vmem:[#allocation8 + $0x530] sm:$0xff] %v1633_v38 }
 0x295   :  { %2135 = vst [vmem:[#allocation8 + $0x688] sm:$0xff] %v3404_v12  ;;  %v1986_v39 = vpop.f32.mrb[99].mxu1 }
 0x296   :  { %2132 = vst [vmem:[#allocation8 + $0x670] sm:$0xff] %v1986_v39  ;;  %v1637_v47 = vpop.f32.mrb[100].mxu0 }
 0x297   :  { %2094 = vst [vmem:[#allocation8 + $0x540] sm:$0xff] %v1637_v47  ;;  %v1639_v40 = vpop.f32.mrb[101].mxu0 }
 0x298   :  { %v3407_v41 = vpop.f32.mrb[100].mxu1  ;;  %2095 = vst [vmem:[#allocation8 + $0x548] sm:$0xff] %v1639_v40 }
 0x299   :  { %2141 = vst [vmem:[#allocation8 + $0x6b8] sm:$0xff] %v3407_v41  ;;  %v1996_v50 = vpop.f32.mrb[101].mxu1 }
 0x29a   :  { %2138 = vst [vmem:[#allocation8 + $0x6a0] sm:$0xff] %v1996_v50  ;;  %v1643_v13 = vpop.f32.mrb[102].mxu0 }
 0x29b   :  { %2097 = vst [vmem:[#allocation8 + $0x558] sm:$0xff] %v1643_v13  ;;  %v1645_v52 = vpop.f32.mrb[103].mxu0 }
 0x29c   :  { %v3410_v42 = vpop.f32.mrb[102].mxu1  ;;  %2098 = vst [vmem:[#allocation8 + $0x560] sm:$0xff] %v1645_v52 }
 0x29d   :  { %2147 = vst [vmem:[#allocation8 + $0x6e8] sm:$0xff] %v3410_v42  ;;  %v2006_v43 = vpop.f32.mrb[103].mxu1 }
 0x29e   :  { %2144 = vst [vmem:[#allocation8 + $0x6d0] sm:$0xff] %v2006_v43  ;;  %v1649_v54 = vpop.f32.mrb[104].mxu0 }
 0x29f   :  { %2100 = vst [vmem:[#allocation8 + $0x570] sm:$0xff] %v1649_v54  ;;  %v1651_v56 = vpop.f32.mrb[105].mxu0 }
 0x2a0   :  { %v3413_v14 = vpop.f32.mrb[104].mxu1  ;;  %2101 = vst [vmem:[#allocation8 + $0x578] sm:$0xff] %v1651_v56 }
 0x2a1   :  { %2153 = vst [vmem:[#allocation8 + $0x718] sm:$0xff] %v3413_v14  ;;  %v2016_v45 = vpop.f32.mrb[105].mxu1 }
 0x2a2   :  { %2150 = vst [vmem:[#allocation8 + $0x700] sm:$0xff] %v2016_v45  ;;  %v1655_v46 = vpop.f32.mrb[106].mxu0 }
 0x2a3   :  { %2103 = vst [vmem:[#allocation8 + $0x588] sm:$0xff] %v1655_v46  ;;  %v1657_v58 = vpop.f32.mrb[107].mxu0 }
 0x2a4   :  { %v3416_v48 = vpop.f32.mrb[106].mxu1  ;;  %2104 = vst [vmem:[#allocation8 + $0x590] sm:$0xff] %v1657_v58 }
 0x2a5   :  { %2159 = vst [vmem:[#allocation8 + $0x748] sm:$0xff] %v3416_v48  ;;  %v2026_v60 = vpop.f32.mrb[107].mxu1 }
 0x2a6   :  { %2156 = vst [vmem:[#allocation8 + $0x730] sm:$0xff] %v2026_v60  ;;  %v1661_v20 = vpop.f32.mrb[108].mxu0 }
 0x2a7   :  { %2106 = vst [vmem:[#allocation8 + $0x5a0] sm:$0xff] %v1661_v20  ;;  %v1663_v21 = vpop.f32.mrb[109].mxu0 }
 0x2a8   :  { %v3419_v22 = vpop.f32.mrb[108].mxu1  ;;  %2107 = vst [vmem:[#allocation8 + $0x5a8] sm:$0xff] %v1663_v21 }
 0x2a9   :  { %2165 = vst [vmem:[#allocation8 + $0x778] sm:$0xff] %v3419_v22  ;;  %v2036_v23 = vpop.f32.mrb[109].mxu1 }
 0x2aa   :  { %2162 = vst [vmem:[#allocation8 + $0x760] sm:$0xff] %v2036_v23  ;;  %v1667_v24 = vpop.f32.mrb[110].mxu0 }
 0x2ab   :  { %2109 = vst [vmem:[#allocation8 + $0x5b8] sm:$0xff] %v1667_v24  ;;  %v1669_v15 = vpop.f32.mrb[111].mxu0 }
 0x2ac   :  { %v2238_v25 = vpop.f32.mrb[110].mxu1  ;;  %2110 = vst [vmem:[#allocation8 + $0x5c0] sm:$0xff] %v1669_v15 }
 0x2ad   :  { %2743 = vst [vmem:[#allocation8 + $0x780] sm:$0xff] %v2238_v25  ;;  %v2240_v44 = vpop.f32.mrb[111].mxu1 }
 0x2ae   :  { %2744 = vst [vmem:[#allocation8 + $0x788] sm:$0xff] %v2240_v44  ;;  %v1673_v49 = vpop.f32.mrb[112].mxu0 }
 0x2af   :  { %2112 = vst [vmem:[#allocation8 + $0x5d0] sm:$0xff] %v1673_v49  ;;  %v1675_v26 = vpop.f32.mrb[113].mxu0 }
 0x2b0   :  { %v2244_v27 = vpop.f32.mrb[112].mxu1  ;;  %2113 = vst [vmem:[#allocation8 + $0x5d8] sm:$0xff] %v1675_v26 }
 0x2b1   :  { %2746 = vst [vmem:[#allocation8 + $0x798] sm:$0xff] %v2244_v27  ;;  %v2246_v51 = vpop.f32.mrb[113].mxu1 }
 0x2b2   :  { %2747 = vst [vmem:[#allocation8 + $0x7a0] sm:$0xff] %v2246_v51  ;;  %v1679_v53 = vpop.f32.mrb[114].mxu0 }
 0x2b3   :  { %2115 = vst [vmem:[#allocation8 + $0x5e8] sm:$0xff] %v1679_v53  ;;  %v1681_v5 = vpop.f32.mrb[115].mxu0 }
 0x2b4   :  { %v2250_v16 = vpop.f32.mrb[114].mxu1  ;;  %2116 = vst [vmem:[#allocation8 + $0x5f0] sm:$0xff] %v1681_v5 }
 0x2b5   :  { %2749 = vst [vmem:[#allocation8 + $0x7b0] sm:$0xff] %v2250_v16  ;;  %v2252_v55 = vpop.f32.mrb[115].mxu1 }
 0x2b6   :  { %2750 = vst [vmem:[#allocation8 + $0x7b8] sm:$0xff] %v2252_v55  ;;  %v1685_v57 = vpop.f32.mrb[116].mxu0 }
 0x2b7   :  { %2118 = vst [vmem:[#allocation8 + $0x600] sm:$0xff] %v1685_v57  ;;  %v1687_v28 = vpop.f32.mrb[117].mxu0 }
 0x2b8   :  { %v2256_v30 = vpop.f32.mrb[116].mxu1  ;;  %2119 = vst [vmem:[#allocation8 + $0x608] sm:$0xff] %v1687_v28 }
 0x2b9   :  { %2752 = vst [vmem:[#allocation8 + $0x7c8] sm:$0xff] %v2256_v30  ;;  %v2258_v59 = vpop.f32.mrb[117].mxu1 }
 0x2ba   :  { %2753 = vst [vmem:[#allocation8 + $0x7d0] sm:$0xff] %v2258_v59  ;;  %v1691_v61 = vpop.f32.mrb[118].mxu0 }
 0x2bb   :  { %2121 = vst [vmem:[#allocation8 + $0x618] sm:$0xff] %v1691_v61  ;;  %v1693_v0 = vpop.f32.mrb[119].mxu0 }
 0x2bc   :  { %v2262_v7 = vpop.f32.mrb[118].mxu1  ;;  %2122 = vst [vmem:[#allocation8 + $0x620] sm:$0xff] %v1693_v0 }
 0x2bd   :  { %2755 = vst [vmem:[#allocation8 + $0x7e0] sm:$0xff] %v2262_v7  ;;  %v2264_v32 = vpop.f32.mrb[119].mxu1 }
 0x2be   :  { %2756 = vst [vmem:[#allocation8 + $0x7e8] sm:$0xff] %v2264_v32  ;;  %v1697_v62 = vpop.f32.mrb[120].mxu0 }
 0x2bf   :  { %2124 = vst [vmem:[#allocation8 + $0x630] sm:$0xff] %v1697_v62  ;;  %v1699_v63 = vpop.f32.mrb[121].mxu0 }
 0x2c0   :  { %v2268_v8 = vpop.f32.mrb[120].mxu1  ;;  %2125 = vst [vmem:[#allocation8 + $0x638] sm:$0xff] %v1699_v63 }
 0x2c1   :  { %2758 = vst [vmem:[#allocation8 + $0x7f8] sm:$0xff] %v2268_v8  ;;  %v2270_v17 = vpop.f32.mrb[121].mxu1 }
 0x2c2   :  { %2759 = vst [vmem:[#allocation8 + $0x800] sm:$0xff] %v2270_v17  ;;  %v1703_v1 = vpop.f32.mrb[122].mxu0 }
 0x2c3   :  { %2127 = vst [vmem:[#allocation8 + $0x648] sm:$0xff] %v1703_v1  ;;  %v1705_v2 = vpop.f32.mrb[123].mxu0 }
 0x2c4   :  { %v2274_v9 = vpop.f32.mrb[122].mxu1  ;;  %2128 = vst [vmem:[#allocation8 + $0x650] sm:$0xff] %v1705_v2 }
 0x2c5   :  { %2761 = vst [vmem:[#allocation8 + $0x810] sm:$0xff] %v2274_v9  ;;  %v2276_v33 = vpop.f32.mrb[123].mxu1 }
 0x2c6   :  { %2762 = vst [vmem:[#allocation8 + $0x818] sm:$0xff] %v2276_v33  ;;  %v1709_v3 = vpop.f32.mrb[124].mxu0 }
 0x2c7   :  { %2130 = vst [vmem:[#allocation8 + $0x660] sm:$0xff] %v1709_v3  ;;  %v1711_v29 = vpop.f32.mrb[125].mxu0 }
 0x2c8   :  { %v2280_v4 = vpop.f32.mrb[124].mxu1  ;;  %2131 = vst [vmem:[#allocation8 + $0x668] sm:$0xff] %v1711_v29 }
 0x2c9   :  { %2764 = vst [vmem:[#allocation8 + $0x828] sm:$0xff] %v2280_v4  ;;  %v2282_v10 = vpop.f32.mrb[125].mxu1 }
 0x2ca   :  { %2765 = vst [vmem:[#allocation8 + $0x830] sm:$0xff] %v2282_v10  ;;  %v1715_v34 = vpop.f32.mrb[126].mxu0 }
 0x2cb   :  { %2133 = vst [vmem:[#allocation8 + $0x678] sm:$0xff] %v1715_v34  ;;  %v1717_v18 = vpop.f32.mrb[127].mxu0 }
 0x2cc   :  { %v2286_v35 = vpop.f32.mrb[126].mxu1  ;;  %2134 = vst [vmem:[#allocation8 + $0x680] sm:$0xff] %v1717_v18 }
 0x2cd   :  { %2767 = vst [vmem:[#allocation8 + $0x840] sm:$0xff] %v2286_v35  ;;  %v2288_v6 = vpop.f32.mrb[127].mxu1 }
 0x2ce   :  { %2768 = vst [vmem:[#allocation8 + $0x848] sm:$0xff] %v2288_v6  ;;  %v1721_v11 = vpop.f32.mrb[128].mxu0 }
 0x2cf   :  { %2136 = vst [vmem:[#allocation8 + $0x690] sm:$0xff] %v1721_v11  ;;  %v1723_v36 = vpop.f32.mrb[129].mxu0 }
 0x2d0   :  { %v2292_v19 = vpop.f32.mrb[128].mxu1  ;;  %2137 = vst [vmem:[#allocation8 + $0x698] sm:$0xff] %v1723_v36 }
 0x2d1   :  { %2770 = vst [vmem:[#allocation8 + $0x858] sm:$0xff] %v2292_v19  ;;  %v2294_v31 = vpop.f32.mrb[129].mxu1 }
 0x2d2   :  { %2771 = vst [vmem:[#allocation8 + $0x860] sm:$0xff] %v2294_v31  ;;  %v1727_v37 = vpop.f32.mrb[130].mxu0 }
 0x2d3   :  { %2139 = vst [vmem:[#allocation8 + $0x6a8] sm:$0xff] %v1727_v37  ;;  %v1729_v38 = vpop.f32.mrb[131].mxu0 }
 0x2d4   :  { %v2298_v12 = vpop.f32.mrb[130].mxu1  ;;  %2140 = vst [vmem:[#allocation8 + $0x6b0] sm:$0xff] %v1729_v38 }
 0x2d5   :  { %2773 = vst [vmem:[#allocation8 + $0x870] sm:$0xff] %v2298_v12  ;;  %v2300_v39 = vpop.f32.mrb[131].mxu1 }
 0x2d6   :  { %2774 = vst [vmem:[#allocation8 + $0x878] sm:$0xff] %v2300_v39  ;;  %v1733_v47 = vpop.f32.mrb[132].mxu0 }
 0x2d7   :  { %2142 = vst [vmem:[#allocation8 + $0x6c0] sm:$0xff] %v1733_v47  ;;  %v1735_v40 = vpop.f32.mrb[133].mxu0 }
 0x2d8   :  { %v2304_v41 = vpop.f32.mrb[132].mxu1  ;;  %2143 = vst [vmem:[#allocation8 + $0x6c8] sm:$0xff] %v1735_v40 }
 0x2d9   :  { %2776 = vst [vmem:[#allocation8 + $0x888] sm:$0xff] %v2304_v41  ;;  %v2306_v50 = vpop.f32.mrb[133].mxu1 }
 0x2da   :  { %2777 = vst [vmem:[#allocation8 + $0x890] sm:$0xff] %v2306_v50  ;;  %v1739_v13 = vpop.f32.mrb[134].mxu0 }
 0x2db   :  { %2145 = vst [vmem:[#allocation8 + $0x6d8] sm:$0xff] %v1739_v13  ;;  %v1741_v52 = vpop.f32.mrb[135].mxu0 }
 0x2dc   :  { %v2310_v42 = vpop.f32.mrb[134].mxu1  ;;  %2146 = vst [vmem:[#allocation8 + $0x6e0] sm:$0xff] %v1741_v52 }
 0x2dd   :  { %2779 = vst [vmem:[#allocation8 + $0x8a0] sm:$0xff] %v2310_v42  ;;  %v2312_v43 = vpop.f32.mrb[135].mxu1 }
 0x2de   :  { %2780 = vst [vmem:[#allocation8 + $0x8a8] sm:$0xff] %v2312_v43  ;;  %v1745_v54 = vpop.f32.mrb[136].mxu0 }
 0x2df   :  { %2148 = vst [vmem:[#allocation8 + $0x6f0] sm:$0xff] %v1745_v54  ;;  %v1747_v56 = vpop.f32.mrb[137].mxu0 }
 0x2e0   :  { %v2316_v14 = vpop.f32.mrb[136].mxu1  ;;  %2149 = vst [vmem:[#allocation8 + $0x6f8] sm:$0xff] %v1747_v56 }
 0x2e1   :  { %2782 = vst [vmem:[#allocation8 + $0x8b8] sm:$0xff] %v2316_v14  ;;  %v2318_v45 = vpop.f32.mrb[137].mxu1 }
 0x2e2   :  { %2783 = vst [vmem:[#allocation8 + $0x8c0] sm:$0xff] %v2318_v45  ;;  %v1751_v46 = vpop.f32.mrb[138].mxu0 }
 0x2e3   :  { %2151 = vst [vmem:[#allocation8 + $0x708] sm:$0xff] %v1751_v46  ;;  %v1753_v58 = vpop.f32.mrb[139].mxu0 }
 0x2e4   :  { %v2322_v48 = vpop.f32.mrb[138].mxu1  ;;  %2152 = vst [vmem:[#allocation8 + $0x710] sm:$0xff] %v1753_v58 }
 0x2e5   :  { %2785 = vst [vmem:[#allocation8 + $0x8d0] sm:$0xff] %v2322_v48  ;;  %v2324_v60 = vpop.f32.mrb[139].mxu1 }
 0x2e6   :  { %2786 = vst [vmem:[#allocation8 + $0x8d8] sm:$0xff] %v2324_v60  ;;  %v1757_v20 = vpop.f32.mrb[140].mxu0 }
 0x2e7   :  { %2154 = vst [vmem:[#allocation8 + $0x720] sm:$0xff] %v1757_v20  ;;  %v1759_v21 = vpop.f32.mrb[141].mxu0 }
 0x2e8   :  { %v2328_v22 = vpop.f32.mrb[140].mxu1  ;;  %2155 = vst [vmem:[#allocation8 + $0x728] sm:$0xff] %v1759_v21 }
 0x2e9   :  { %2788 = vst [vmem:[#allocation8 + $0x8e8] sm:$0xff] %v2328_v22  ;;  %v2330_v23 = vpop.f32.mrb[141].mxu1 }
 0x2ea   :  { %2789 = vst [vmem:[#allocation8 + $0x8f0] sm:$0xff] %v2330_v23  ;;  %v1763_v24 = vpop.f32.mrb[142].mxu0 }
 0x2eb   :  { %2157 = vst [vmem:[#allocation8 + $0x738] sm:$0xff] %v1763_v24  ;;  %v1765_v15 = vpop.f32.mrb[143].mxu0 }
 0x2ec   :  { %v2334_v25 = vpop.f32.mrb[142].mxu1  ;;  %2158 = vst [vmem:[#allocation8 + $0x740] sm:$0xff] %v1765_v15 }
 0x2ed   :  { %2791 = vst [vmem:[#allocation8 + $0x900] sm:$0xff] %v2334_v25  ;;  %v2336_v44 = vpop.f32.mrb[143].mxu1 }
 0x2ee   :  { %2792 = vst [vmem:[#allocation8 + $0x908] sm:$0xff] %v2336_v44  ;;  %v1769_v49 = vpop.f32.mrb[144].mxu0 }
 0x2ef   :  { %2160 = vst [vmem:[#allocation8 + $0x750] sm:$0xff] %v1769_v49  ;;  %v1771_v26 = vpop.f32.mrb[145].mxu0 }
 0x2f0   :  { %v2340_v27 = vpop.f32.mrb[144].mxu1  ;;  %2161 = vst [vmem:[#allocation8 + $0x758] sm:$0xff] %v1771_v26 }
 0x2f1   :  { %2794 = vst [vmem:[#allocation8 + $0x918] sm:$0xff] %v2340_v27  ;;  %v2342_v51 = vpop.f32.mrb[145].mxu1 }
 0x2f2   :  { %2795 = vst [vmem:[#allocation8 + $0x920] sm:$0xff] %v2342_v51  ;;  %v1775_v53 = vpop.f32.mrb[146].mxu0 }
 0x2f3   :  { %2163 = vst [vmem:[#allocation8 + $0x768] sm:$0xff] %v1775_v53  ;;  %v1777_v5 = vpop.f32.mrb[147].mxu0 }
 0x2f4   :  { %v2346_v16 = vpop.f32.mrb[146].mxu1  ;;  %2164 = vst [vmem:[#allocation8 + $0x770] sm:$0xff] %v1777_v5 }
 0x2f5   :  { %2797 = vst [vmem:[#allocation8 + $0x930] sm:$0xff] %v2346_v16  ;;  %v2348_v55 = vpop.f32.mrb[147].mxu1 }
 0x2f6   :  { %2798 = vst [vmem:[#allocation8 + $0x938] sm:$0xff] %v2348_v55  ;;  %v3426_v57 = vpop.f32.mrb[148].mxu0 }
 0x2f7   :  { %2748 = vst [vmem:[#allocation8 + $0x7a8] sm:$0xff] %v3426_v57  ;;  %v2543_v28 = vpop.f32.mrb[149].mxu0 }
 0x2f8   :  { %v2352_v30 = vpop.f32.mrb[148].mxu1  ;;  %2745 = vst [vmem:[#allocation8 + $0x790] sm:$0xff] %v2543_v28 }
 0x2f9   :  { %2800 = vst [vmem:[#allocation8 + $0x948] sm:$0xff] %v2352_v30  ;;  %v2354_v59 = vpop.f32.mrb[149].mxu1 }
 0x2fa   :  { %2801 = vst [vmem:[#allocation8 + $0x950] sm:$0xff] %v2354_v59  ;;  %v3429_v61 = vpop.f32.mrb[150].mxu0 }
 0x2fb   :  { %2754 = vst [vmem:[#allocation8 + $0x7d8] sm:$0xff] %v3429_v61  ;;  %v2553_v0 = vpop.f32.mrb[151].mxu0 }
 0x2fc   :  { %v2358_v7 = vpop.f32.mrb[150].mxu1  ;;  %2751 = vst [vmem:[#allocation8 + $0x7c0] sm:$0xff] %v2553_v0 }
 0x2fd   :  { %2803 = vst [vmem:[#allocation8 + $0x960] sm:$0xff] %v2358_v7  ;;  %v2360_v32 = vpop.f32.mrb[151].mxu1 }
 0x2fe   :  { %2804 = vst [vmem:[#allocation8 + $0x968] sm:$0xff] %v2360_v32  ;;  %v3432_v62 = vpop.f32.mrb[152].mxu0 }
 0x2ff   :  { %2760 = vst [vmem:[#allocation8 + $0x808] sm:$0xff] %v3432_v62  ;;  %v2563_v63 = vpop.f32.mrb[153].mxu0 }
 0x300   :  { %v2364_v8 = vpop.f32.mrb[152].mxu1  ;;  %2757 = vst [vmem:[#allocation8 + $0x7f0] sm:$0xff] %v2563_v63 }
 0x301   :  { %2806 = vst [vmem:[#allocation8 + $0x978] sm:$0xff] %v2364_v8  ;;  %v2366_v17 = vpop.f32.mrb[153].mxu1 }
 0x302   :  { %2807 = vst [vmem:[#allocation8 + $0x980] sm:$0xff] %v2366_v17  ;;  %v3435_v1 = vpop.f32.mrb[154].mxu0 }
 0x303   :  { %2766 = vst [vmem:[#allocation8 + $0x838] sm:$0xff] %v3435_v1  ;;  %v2573_v2 = vpop.f32.mrb[155].mxu0 }
 0x304   :  { %v2370_v9 = vpop.f32.mrb[154].mxu1  ;;  %2763 = vst [vmem:[#allocation8 + $0x820] sm:$0xff] %v2573_v2 }
 0x305   :  { %2809 = vst [vmem:[#allocation8 + $0x990] sm:$0xff] %v2370_v9  ;;  %v2372_v33 = vpop.f32.mrb[155].mxu1 }
 0x306   :  { %2810 = vst [vmem:[#allocation8 + $0x998] sm:$0xff] %v2372_v33  ;;  %v3438_v3 = vpop.f32.mrb[156].mxu0 }
 0x307   :  { %2772 = vst [vmem:[#allocation8 + $0x868] sm:$0xff] %v3438_v3  ;;  %v2583_v29 = vpop.f32.mrb[157].mxu0 }
 0x308   :  { %v2376_v4 = vpop.f32.mrb[156].mxu1  ;;  %2769 = vst [vmem:[#allocation8 + $0x850] sm:$0xff] %v2583_v29 }
 0x309   :  { %2812 = vst [vmem:[#allocation8 + $0x9a8] sm:$0xff] %v2376_v4  ;;  %v2378_v10 = vpop.f32.mrb[157].mxu1 }
 0x30a   :  { %2813 = vst [vmem:[#allocation8 + $0x9b0] sm:$0xff] %v2378_v10  ;;  %v3441_v34 = vpop.f32.mrb[158].mxu0 }
 0x30b   :  { %2778 = vst [vmem:[#allocation8 + $0x898] sm:$0xff] %v3441_v34  ;;  %v2593_v18 = vpop.f32.mrb[159].mxu0 }
 0x30c   :  { %v2382_v35 = vpop.f32.mrb[158].mxu1  ;;  %2775 = vst [vmem:[#allocation8 + $0x880] sm:$0xff] %v2593_v18 }
 0x30d   :  { %2815 = vst [vmem:[#allocation8 + $0x9c0] sm:$0xff] %v2382_v35  ;;  %v2384_v6 = vpop.f32.mrb[159].mxu1 }
 0x30e   :  { %2816 = vst [vmem:[#allocation8 + $0x9c8] sm:$0xff] %v2384_v6  ;;  %v3444_v11 = vpop.f32.mrb[160].mxu0 }
 0x30f   :  { %2784 = vst [vmem:[#allocation8 + $0x8c8] sm:$0xff] %v3444_v11  ;;  %v2603_v36 = vpop.f32.mrb[161].mxu0 }
 0x310   :  { %v2388_v19 = vpop.f32.mrb[160].mxu1  ;;  %2781 = vst [vmem:[#allocation8 + $0x8b0] sm:$0xff] %v2603_v36 }
 0x311   :  { %2818 = vst [vmem:[#allocation8 + $0x9d8] sm:$0xff] %v2388_v19  ;;  %v2390_v31 = vpop.f32.mrb[161].mxu1 }
 0x312   :  { %2819 = vst [vmem:[#allocation8 + $0x9e0] sm:$0xff] %v2390_v31  ;;  %v3447_v37 = vpop.f32.mrb[162].mxu0 }
 0x313   :  { %2790 = vst [vmem:[#allocation8 + $0x8f8] sm:$0xff] %v3447_v37  ;;  %v2613_v38 = vpop.f32.mrb[163].mxu0 }
 0x314   :  { %v2394_v12 = vpop.f32.mrb[162].mxu1  ;;  %2787 = vst [vmem:[#allocation8 + $0x8e0] sm:$0xff] %v2613_v38 }
 0x315   :  { %2821 = vst [vmem:[#allocation8 + $0x9f0] sm:$0xff] %v2394_v12  ;;  %v2396_v39 = vpop.f32.mrb[163].mxu1 }
 0x316   :  { %2822 = vst [vmem:[#allocation8 + $0x9f8] sm:$0xff] %v2396_v39  ;;  %v3450_v47 = vpop.f32.mrb[164].mxu0 }
 0x317   :  { %2796 = vst [vmem:[#allocation8 + $0x928] sm:$0xff] %v3450_v47  ;;  %v2623_v40 = vpop.f32.mrb[165].mxu0 }
 0x318   :  { %v2400_v41 = vpop.f32.mrb[164].mxu1  ;;  %2793 = vst [vmem:[#allocation8 + $0x910] sm:$0xff] %v2623_v40 }
 0x319   :  { %2824 = vst [vmem:[#allocation8 + $0xa08] sm:$0xff] %v2400_v41  ;;  %v2402_v50 = vpop.f32.mrb[165].mxu1 }
 0x31a   :  { %2825 = vst [vmem:[#allocation8 + $0xa10] sm:$0xff] %v2402_v50  ;;  %v3453_v13 = vpop.f32.mrb[166].mxu0 }
 0x31b   :  { %2802 = vst [vmem:[#allocation8 + $0x958] sm:$0xff] %v3453_v13  ;;  %v2633_v52 = vpop.f32.mrb[167].mxu0 }
 0x31c   :  { %v2406_v42 = vpop.f32.mrb[166].mxu1  ;;  %2799 = vst [vmem:[#allocation8 + $0x940] sm:$0xff] %v2633_v52 }
 0x31d   :  { %2827 = vst [vmem:[#allocation8 + $0xa20] sm:$0xff] %v2406_v42  ;;  %v2408_v43 = vpop.f32.mrb[167].mxu1 }
 0x31e   :  { %2828 = vst [vmem:[#allocation8 + $0xa28] sm:$0xff] %v2408_v43  ;;  %v3456_v54 = vpop.f32.mrb[168].mxu0 }
 0x31f   :  { %2808 = vst [vmem:[#allocation8 + $0x988] sm:$0xff] %v3456_v54  ;;  %v2643_v56 = vpop.f32.mrb[169].mxu0 }
 0x320   :  { %v2412_v14 = vpop.f32.mrb[168].mxu1  ;;  %2805 = vst [vmem:[#allocation8 + $0x970] sm:$0xff] %v2643_v56 }
 0x321   :  { %2830 = vst [vmem:[#allocation8 + $0xa38] sm:$0xff] %v2412_v14  ;;  %v2414_v45 = vpop.f32.mrb[169].mxu1 }
 0x322   :  { %2831 = vst [vmem:[#allocation8 + $0xa40] sm:$0xff] %v2414_v45  ;;  %v3459_v46 = vpop.f32.mrb[170].mxu0 }
 0x323   :  { %2814 = vst [vmem:[#allocation8 + $0x9b8] sm:$0xff] %v3459_v46  ;;  %v2653_v58 = vpop.f32.mrb[171].mxu0 }
 0x324   :  { %v2418_v48 = vpop.f32.mrb[170].mxu1  ;;  %2811 = vst [vmem:[#allocation8 + $0x9a0] sm:$0xff] %v2653_v58 }
 0x325   :  { %2833 = vst [vmem:[#allocation8 + $0xa50] sm:$0xff] %v2418_v48  ;;  %v2420_v60 = vpop.f32.mrb[171].mxu1 }
 0x326   :  { %2834 = vst [vmem:[#allocation8 + $0xa58] sm:$0xff] %v2420_v60  ;;  %v3462_v20 = vpop.f32.mrb[172].mxu0 }
 0x327   :  { %2820 = vst [vmem:[#allocation8 + $0x9e8] sm:$0xff] %v3462_v20  ;;  %v2663_v21 = vpop.f32.mrb[173].mxu0 }
 0x328   :  { %v2424_v22 = vpop.f32.mrb[172].mxu1  ;;  %2817 = vst [vmem:[#allocation8 + $0x9d0] sm:$0xff] %v2663_v21 }
 0x329   :  { %2836 = vst [vmem:[#allocation8 + $0xa68] sm:$0xff] %v2424_v22  ;;  %v2426_v23 = vpop.f32.mrb[173].mxu1 }
 0x32a   :  { %2837 = vst [vmem:[#allocation8 + $0xa70] sm:$0xff] %v2426_v23  ;;  %v3465_v24 = vpop.f32.mrb[174].mxu0 }
 0x32b   :  { %2826 = vst [vmem:[#allocation8 + $0xa18] sm:$0xff] %v3465_v24  ;;  %v2673_v15 = vpop.f32.mrb[175].mxu0 }
 0x32c   :  { %v2430_v25 = vpop.f32.mrb[174].mxu1  ;;  %2823 = vst [vmem:[#allocation8 + $0xa00] sm:$0xff] %v2673_v15 }
 0x32d   :  { %2839 = vst [vmem:[#allocation8 + $0xa80] sm:$0xff] %v2430_v25  ;;  %v2432_v44 = vpop.f32.mrb[175].mxu1 }
 0x32e   :  { %2840 = vst [vmem:[#allocation8 + $0xa88] sm:$0xff] %v2432_v44  ;;  %v3468_v49 = vpop.f32.mrb[176].mxu0 }
 0x32f   :  { %2832 = vst [vmem:[#allocation8 + $0xa48] sm:$0xff] %v3468_v49  ;;  %v2683_v26 = vpop.f32.mrb[177].mxu0 }
 0x330   :  { %v2436_v27 = vpop.f32.mrb[176].mxu1  ;;  %2829 = vst [vmem:[#allocation8 + $0xa30] sm:$0xff] %v2683_v26 }
 0x331   :  { %2842 = vst [vmem:[#allocation8 + $0xa98] sm:$0xff] %v2436_v27  ;;  %v2438_v51 = vpop.f32.mrb[177].mxu1 }
 0x332   :  { %2843 = vst [vmem:[#allocation8 + $0xaa0] sm:$0xff] %v2438_v51  ;;  %v3471_v53 = vpop.f32.mrb[178].mxu0 }
 0x333   :  { %2838 = vst [vmem:[#allocation8 + $0xa78] sm:$0xff] %v3471_v53  ;;  %v2693_v5 = vpop.f32.mrb[179].mxu0 }
 0x334   :  { %v2442_v16 = vpop.f32.mrb[178].mxu1  ;;  %2835 = vst [vmem:[#allocation8 + $0xa60] sm:$0xff] %v2693_v5 }
 0x335   :  { %2845 = vst [vmem:[#allocation8 + $0xab0] sm:$0xff] %v2442_v16  ;;  %v2444_v55 = vpop.f32.mrb[179].mxu1 }
 0x336   :  { %2846 = vst [vmem:[#allocation8 + $0xab8] sm:$0xff] %v2444_v55  ;;  %v3474_v57 = vpop.f32.mrb[180].mxu0 }
 0x337   :  { %2844 = vst [vmem:[#allocation8 + $0xaa8] sm:$0xff] %v3474_v57  ;;  %v2703_v28 = vpop.f32.mrb[181].mxu0 }
 0x338   :  { %v2448_v30 = vpop.f32.mrb[180].mxu1  ;;  %2841 = vst [vmem:[#allocation8 + $0xa90] sm:$0xff] %v2703_v28 }
 0x339   :  { %2848 = vst [vmem:[#allocation8 + $0xac8] sm:$0xff] %v2448_v30  ;;  %v2450_v59 = vpop.f32.mrb[181].mxu1 }
 0x33a   :  { %2849 = vst [vmem:[#allocation8 + $0xad0] sm:$0xff] %v2450_v59  ;;  %v3477_v61 = vpop.f32.mrb[182].mxu0 }
 0x33b   :  { %2850 = vst [vmem:[#allocation8 + $0xad8] sm:$0xff] %v3477_v61  ;;  %v2713_v0 = vpop.f32.mrb[183].mxu0 }
 0x33c   :  { %v2454_v7 = vpop.f32.mrb[182].mxu1  ;;  %2847 = vst [vmem:[#allocation8 + $0xac0] sm:$0xff] %v2713_v0 }
 0x33d   :  { %2851 = vst [vmem:[#allocation8 + $0xae0] sm:$0xff] %v2454_v7  ;;  %v2456_v32 = vpop.f32.mrb[183].mxu1 }
 0x33e   :  { %2852 = vst [vmem:[#allocation8 + $0xae8] sm:$0xff] %v2456_v32  ;;  %v3480_v62 = vpop.f32.mrb[184].mxu0 }
 0x33f   :  { %2856 = vst [vmem:[#allocation8 + $0xb08] sm:$0xff] %v3480_v62  ;;  %v2723_v63 = vpop.f32.mrb[185].mxu0 }
 0x340   :  { %v2460_v8 = vpop.f32.mrb[184].mxu1  ;;  %2853 = vst [vmem:[#allocation8 + $0xaf0] sm:$0xff] %v2723_v63 }
 0x341   :  { %2854 = vst [vmem:[#allocation8 + $0xaf8] sm:$0xff] %v2460_v8  ;;  %v2462_v17 = vpop.f32.mrb[185].mxu1 }
 0x342   :  { %2855 = vst [vmem:[#allocation8 + $0xb00] sm:$0xff] %v2462_v17  ;;  %v3483_v1 = vpop.f32.mrb[186].mxu0 }
 0x343   :  { %2862 = vst [vmem:[#allocation8 + $0xb38] sm:$0xff] %v3483_v1  ;;  %v2733_v2 = vpop.f32.mrb[187].mxu0 }
 0x344   :  { %v2466_v9 = vpop.f32.mrb[186].mxu1  ;;  %2859 = vst [vmem:[#allocation8 + $0xb20] sm:$0xff] %v2733_v2 }
 0x345   :  { %2857 = vst [vmem:[#allocation8 + $0xb10] sm:$0xff] %v2466_v9  ;;  %v2468_v33 = vpop.f32.mrb[187].mxu1 }
 0x346   :  { %2858 = vst [vmem:[#allocation8 + $0xb18] sm:$0xff] %v2468_v33 }
 0x348   :  { %v2472_v3 = vpop.f32.mrb[188].mxu1 }
 0x349   :  { %2860 = vst [vmem:[#allocation8 + $0xb28] sm:$0xff] %v2472_v3  ;;  %v2474_v29 = vpop.f32.mrb[189].mxu1 }
 0x34a   :  { %2861 = vst [vmem:[#allocation8 + $0xb30] sm:$0xff] %v2474_v29 }
 0x34b   :  { %3613 = shalt.err (!%p3610_p6)
}
 0x34c   :  { %s3614_s19 = scalar_lea.hbm %s4570_s3, 46080 }
 0x34d   :  { %p3615_p7 = scmp.ne.s32.totalorder %s4570_s3, %s3614_s19  ;;  %p3618_p8 = scmp.lt.u32.totalorder %s3614_s19, %s4570_s3 }
 0x34f   :  { %p3620_p9 = pnand %p3618_p8, %p3615_p7 }
 0x351   :  { %3623 = shalt.err (!%p3620_p9)
}
 0x352   :  { %2874 = dma.vmem_to_hbm [thread:$0]  %s2869_s15, 46080, %s4570_s3, [#allocation5], %s3634_s0, %s3634_s0, %s3635_s9  }
 0x353   :  { %3628 = dma.done.wait [#allocation5], 46080  }
 0x354   :  { %3629 = vsyncadd [#allocation5], 4294921216 }
 0x355   :  { %2878 = vsyncpa [#allocation4], 1 }
 0x356   :  { %2879 = vsyncpa [#allocation7], 1 }
 0x357   :  { %2880 = vsyncpa [#allocation5], 1 }

</bundles_post_ra>
